<compile_context>
chip_gen: v7x
topology: tpu7x:2x2x1
jax: 0.10.0
libtpu: 0.0.40
codegen_flags: <defaults>
</compile_context>

<pallas_src>
import functools

import jax
import jax.numpy as jnp
import numpy as np
from jax import lax
from jax.experimental import pallas as pl
from jax.experimental.pallas import tpu as pltpu


def _sigmoid(x):
    # numerically-stable sigmoid via tanh (maps to the EUP)
    return 0.5 * (jnp.tanh(0.5 * x) + 1.0)


def _softplus(x):
    # matches torch.nn.functional.softplus (threshold = 20)
    return jnp.where(x > 20.0, x, jnp.log1p(jnp.exp(jnp.minimum(x, 20.0))))


def mamba2_kernel(u_ref, w_in_ref, conv_w_ref, conv_b_ref, dt_bias_ref, A_ref,
                  D_ref, norm_w_ref, w_fused_ref, b_lin_ref, o_ref,
                  *, B_blk, L, d_state, d_conv, d_inner, nheads, headdim,
                  d_model):
    conv_dim = d_inner + 2 * d_state
    N = B_blk * L                                 # rows of the fused batch*seq slab

    # ---------------- in_proj (no bias), bf16 operands / f32 accumulate ----------------
    u = u_ref[...].reshape(N, d_model)            # merge (B_blk, L) -> rows (cheap)
    zxbcdt = jnp.dot(u.astype(jnp.bfloat16), w_in_ref[...],
                     preferred_element_type=jnp.float32)        # (N, d_in_proj) f32
    z = zxbcdt[:, :d_inner]                                      # gate branch
    xBC = zxbcdt[:, d_inner:d_inner + conv_dim]                  # conv branch
    dt = _softplus(zxbcdt[:, d_inner + conv_dim:] + dt_bias_ref[...])   # (N, nheads)

    # ---------------- depthwise causal Conv1d + SiLU (per sequence) ----------------
    xBC3 = xBC.reshape(B_blk, L, conv_dim)        # split rows back to (B_blk, L, C)
    conv_w = conv_w_ref[...]                      # (d_conv, conv_dim)
    xpad = jnp.concatenate(
        [jnp.zeros((B_blk, d_conv - 1, conv_dim), jnp.float32), xBC3], axis=1)
    acc = jnp.zeros((B_blk, L, conv_dim), jnp.float32) + conv_b_ref[...]
    for k in range(d_conv):                       # static unroll (d_conv = 4)
        acc = acc + xpad[:, k:k + L, :] * conv_w[k:k + 1, :]
    xBC_c = acc * _sigmoid(acc)                   # SiLU

    x = xBC_c[:, :, :d_inner]                                    # (B_blk, L, d_inner)
    Bm = xBC_c[:, :, d_inner:d_inner + d_state]                  # (B_blk, L, d_state)
    Cm = xBC_c[:, :, d_inner + d_state:]                         # (B_blk, L, d_state)

    # ---------------- SSD (exact quadratic form, single chunk) ----------------
    dt3 = dt.reshape(B_blk, L, nheads)
    dtA = dt3 * A_ref[...]                                       # (B_blk, L, H), <= 0

    rid = lax.broadcasted_iota(jnp.int32, (L, L), 0)
    cid = lax.broadcasted_iota(jnp.int32, (L, L), 1)
    tril = cid <= rid
    T = jnp.where(tril, 1.0, 0.0).astype(jnp.float32)            # causal cumsum matrix
    Tb = jnp.broadcast_to(T[None], (B_blk, L, L))                # hoisted (not per head)

    # inclusive causal cumsum: S[b,t,h] = sum_{s<=t} dtA[b,s,h]; row form via transpose.
    S = jnp.einsum('bts,bsh->bth', Tb, dtA,
                   preferred_element_type=jnp.float32)            # (B_blk, L, H)
    St = jnp.swapaxes(S, 1, 2)                                    # (B_blk, H, L)

    CB = jnp.einsum('btn,bsn->bts', Cm.astype(jnp.bfloat16), Bm.astype(jnp.bfloat16),
                    preferred_element_type=jnp.float32)           # (B_blk, L, L)

    y_heads = []
    for h in range(nheads):                       # static unroll; fine for small nheads
        diff = S[:, :, h:h + 1] - St[:, h:h + 1, :]               # (B_blk, L, L), <=0 on tril
        decay = jnp.exp(jnp.where(tril, diff, 0.0))
        M = jnp.where(tril, CB * decay, 0.0)
        # per-head slice of x scaled by this head's dt (no full-width masking)
        xh = x[:, :, h * headdim:(h + 1) * headdim] * dt3[:, :, h:h + 1]
        y_heads.append(
            jnp.einsum('bts,bsd->btd', M.astype(jnp.bfloat16), xh.astype(jnp.bfloat16),
                       preferred_element_type=jnp.float32))       # (B_blk, L, headdim)
    y = jnp.concatenate(y_heads, axis=-1) + D_ref[...] * x        # D skip connection

    # ---------------- gated RMSNorm (norm_before_gate=False, eps=1e-5) ----------------
    yf = y.reshape(N, d_inner)
    yg = yf * (z * _sigmoid(z))
    var = jnp.mean(yg * yg, axis=-1, keepdims=True)
    yn = yg * lax.rsqrt(var + 1e-5) * norm_w_ref[...]

    # ---------------- fused (out_proj @ final Linear) + bias ----------------
    out = jnp.dot(yn.astype(jnp.bfloat16), w_fused_ref[...],
                  preferred_element_type=jnp.float32) + b_lin_ref[...]
    o_ref[...] = out.reshape(B_blk, L, d_model).astype(o_ref.dtype)


def _auto_batch_block(Bsz, L, target_rows=256):
    """Pick a batch block: big enough to feed the MXU, but keep >=2 grid steps."""
    for c in range(1, Bsz + 1):
        if Bsz % c == 0 and c * L >= target_rows:
            return c
    for c in range(Bsz // 2, 0, -1):
        if Bsz % c == 0 and (Bsz // c) >= 2:
            return c
    return Bsz


def self_supervised_mamba2(u, params, *, d_state, d_conv, headdim, b_blk=None):
    Bsz, L, d_model = u.shape
    d_inner = params['w_fused'].shape[0]
    nheads = d_inner // headdim
    conv_dim = d_inner + 2 * d_state
    d_in_proj = 2 * d_inner + 2 * d_state + nheads

    if b_blk is None:
        b_blk = _auto_batch_block(Bsz, L)
    assert Bsz % b_blk == 0, "batch block must divide the batch"

    kernel = functools.partial(
        mamba2_kernel, B_blk=b_blk, L=L, d_state=d_state, d_conv=d_conv,
        d_inner=d_inner, nheads=nheads, headdim=headdim, d_model=d_model)

    def full(shape):
        return pl.BlockSpec(shape, lambda b: (0,) * len(shape))

    in_specs = [
        pl.BlockSpec((b_blk, L, d_model), lambda b: (b, 0, 0)),   # u (batch block)
        full((d_model, d_in_proj)),                               # in_proj weight^T (bf16)
        full((d_conv, conv_dim)),                                 # conv weight^T
        full((1, conv_dim)),                                      # conv bias
        full((1, nheads)),                                        # dt_bias
        full((1, nheads)),                                        # A = -exp(A_log)
        full((1, d_inner)),                                       # D broadcast to channels
        full((1, d_inner)),                                       # RMSNorm weight
        full((d_inner, d_model)),                                 # fused out_proj@linear (bf16)
        full((1, d_model)),                                       # final linear bias
    ]
    out_spec = pl.BlockSpec((b_blk, L, d_model), lambda b: (b, 0, 0))

    return pl.pallas_call(
        kernel,
        out_shape=jax.ShapeDtypeStruct((Bsz, L, d_model), jnp.float32),
        grid=(Bsz // b_blk,),
        in_specs=in_specs,
        out_specs=out_spec,
        compiler_params=pltpu.CompilerParams(dimension_semantics=("parallel",)),
    )(u, params['w_in_t'], params['conv_w_t'], params['conv_b'],
      params['dt_bias'], params['A'], params['D_full'], params['norm_w'],
      params['w_fused'], params['b_lin'])


def init_params(key, d_model, d_state, d_conv, expand, headdim):
    d_inner = expand * d_model
    nheads = d_inner // headdim
    conv_dim = d_inner + 2 * d_state
    d_in_proj = 2 * d_inner + 2 * d_state + nheads
    ks = jax.random.split(key, 8)
    # matmul weights stored in bf16 (MXU-native); everything else f32
    w_in_t = (0.02 * jax.random.normal(ks[0], (d_model, d_in_proj), jnp.float32)
              ).astype(jnp.bfloat16)
    conv_w_t = 0.10 * jax.random.normal(ks[1], (d_conv, conv_dim), jnp.float32)
    conv_b = 0.05 * jax.random.normal(ks[2], (1, conv_dim), jnp.float32)
    # dt_bias = inverse-softplus of dt values in [dt_min, dt_max]  (Mamba2 init)
    dtv = jnp.exp(jnp.linspace(jnp.log(1e-3), jnp.log(1e-1), nheads))
    dt_bias = (dtv + jnp.log(-jnp.expm1(-dtv))).reshape(1, nheads).astype(jnp.float32)
    A_log = jnp.log(jnp.linspace(1.0, 16.0, nheads)).astype(jnp.float32)
    A = (-jnp.exp(A_log)).reshape(1, nheads)
    D = jnp.ones((nheads,), jnp.float32)                              # Mamba2 init
    D_full = jnp.repeat(D, headdim).reshape(1, d_inner)
    norm_w = (1.0 + 0.1 * jax.random.normal(ks[3], (d_inner,), jnp.float32)
              ).reshape(1, d_inner)
    w_out_t = 0.02 * jax.random.normal(ks[4], (d_inner, d_model), jnp.float32)
    w_lin_t = 0.05 * jax.random.normal(ks[5], (d_model, d_model), jnp.float32)
    b_lin = 0.01 * jax.random.normal(ks[6], (1, d_model), jnp.float32)
    # out_proj and the final Linear have no nonlinearity between them -> fuse on host
    w_fused = jnp.dot(w_out_t, w_lin_t).astype(jnp.bfloat16)
    return dict(w_in_t=w_in_t, conv_w_t=conv_w_t, conv_b=conv_b, dt_bias=dt_bias,
                A=A, D=D, D_full=D_full, norm_w=norm_w, w_out_t=w_out_t,
                w_lin_t=w_lin_t, b_lin=b_lin, w_fused=w_fused)


def reference_forward(u, p, *, d_state, d_conv, headdim):
    """Pure-JAX f32 reference using the sequential SSM recurrence."""
    Bsz, L, d_model = u.shape
    d_inner = p['w_out_t'].shape[0]
    nheads = d_inner // headdim
    conv_dim = d_inner + 2 * d_state

    w_in = p['w_in_t'].astype(jnp.float32)
    zxbcdt = jnp.einsum('bld,dp->blp', u, w_in)
    z = zxbcdt[..., :d_inner]
    xBC = zxbcdt[..., d_inner:d_inner + conv_dim]
    dt = _softplus(zxbcdt[..., d_inner + conv_dim:] + p['dt_bias'][0])

    xpad = jnp.pad(xBC, ((0, 0), (d_conv - 1, 0), (0, 0)))
    conv = jnp.zeros_like(xBC) + p['conv_b'][0][None, None, :]
    for k in range(d_conv):
        conv = conv + xpad[:, k:k + L, :] * p['conv_w_t'][k][None, None, :]
    xBC_c = conv * _sigmoid(conv)

    x = xBC_c[..., :d_inner].reshape(Bsz, L, nheads, headdim)
    Bm = xBC_c[..., d_inner:d_inner + d_state]
    Cm = xBC_c[..., d_inner + d_state:]
    A = p['A'][0]                                                    # (nheads,), negative

    def scan_one(xb, dtb, Bb, Cb):
        def step(h, inp):
            x_t, dt_t, B_t, C_t = inp
            dA = jnp.exp(dt_t * A)
            h = h * dA[:, None, None] + dt_t[:, None, None] * x_t[:, :, None] * B_t[None, None, :]
            y_t = jnp.einsum('hpn,n->hp', h, C_t)
            return h, y_t
        h0 = jnp.zeros((nheads, headdim, d_state), jnp.float32)
        _, ys = lax.scan(step, h0, (xb, dtb, Bb, Cb))
        return ys

    ys = jax.vmap(scan_one)(x, dt, Bm, Cm)                           # (B, L, nh, hd)
    y = (ys + p['D'][None, None, :, None] * x).reshape(Bsz, L, d_inner)
    yg = y * (z * _sigmoid(z))
    var = jnp.mean(yg * yg, axis=-1, keepdims=True)
    yn = yg * lax.rsqrt(var + 1e-5) * p['norm_w'][0][None, None, :]
    out = jnp.einsum('bld,dm->blm', yn, p['w_out_t'])
    out = jnp.einsum('blm,mn->bln', out, p['w_lin_t']) + p['b_lin'][0][None, None, :]
    return out


if __name__ == "__main__":
    # Small shapes consistent with SelfSupervisedMamba2(d_model, d_state, d_conv=4, expand=2).
    # headdim=16 (Mamba2 hyperparameter) so d_inner=64 -> nheads=4.
    Bsz, L = 4, 8
    d_model, d_state, d_conv, expand, headdim = 32, 8, 4, 2, 16

    key = jax.random.PRNGKey(0)
    k_par, k_in = jax.random.split(key)
    params = init_params(k_par, d_model, d_state, d_conv, expand, headdim)
    u = jax.random.normal(k_in, (Bsz, L, d_model), jnp.float32)

    out = self_supervised_mamba2(u, params, d_state=d_state, d_conv=d_conv,
                                 headdim=headdim)
    out = jax.block_until_ready(out)

    ref = jax.block_until_ready(
        reference_forward(u, params, d_state=d_state, d_conv=d_conv, headdim=headdim))
    assert out.shape == (Bsz, L, d_model)
    # bf16 matmul operands (f32 accumulation) -> tolerance looser than pure-f32
    assert np.allclose(np.asarray(out), np.asarray(ref), atol=5e-3, rtol=5e-2), \
        f"max abs err {np.max(np.abs(np.asarray(out) - np.asarray(ref)))}"
    print("KERNEL_OK")
</pallas_src>

<mosaic_0001>
module attributes {stable_mosaic.version = 11 : i64} {
  func.func @mamba2_kernel(%arg0: i32, %arg1: memref<2x8x32xf32, #tpu.memory_space<vmem>>, %arg2: memref<32x148xbf16, #tpu.memory_space<vmem>>, %arg3: memref<4x80xf32, #tpu.memory_space<vmem>>, %arg4: memref<1x80xf32, #tpu.memory_space<vmem>>, %arg5: memref<1x4xf32, #tpu.memory_space<vmem>>, %arg6: memref<1x4xf32, #tpu.memory_space<vmem>>, %arg7: memref<1x64xf32, #tpu.memory_space<vmem>>, %arg8: memref<1x64xf32, #tpu.memory_space<vmem>>, %arg9: memref<64x32xbf16, #tpu.memory_space<vmem>>, %arg10: memref<1x32xf32, #tpu.memory_space<vmem>>, %arg11: memref<2x8x32xf32, #tpu.memory_space<vmem>>) attributes {dimension_semantics = [#tpu.dimension_semantics<parallel>], iteration_bounds = array<i64: 2>, scalar_prefetch = 0 : i64, scratch_operands = 0 : i64, tpu.core_type = #tpu.core_type<tc>, window_params = [{transform_indices = @transform_0, window_bounds = array<i64: 2, 8, 32>}, {pipeline_mode = #tpu.pipeline_mode<synchronous>, transform_indices = @transform_1, window_bounds = array<i64: 32, 148>}, {pipeline_mode = #tpu.pipeline_mode<synchronous>, transform_indices = @transform_2, window_bounds = array<i64: 4, 80>}, {pipeline_mode = #tpu.pipeline_mode<synchronous>, transform_indices = @transform_3, window_bounds = array<i64: 1, 80>}, {pipeline_mode = #tpu.pipeline_mode<synchronous>, transform_indices = @transform_4, window_bounds = array<i64: 1, 4>}, {pipeline_mode = #tpu.pipeline_mode<synchronous>, transform_indices = @transform_5, window_bounds = array<i64: 1, 4>}, {pipeline_mode = #tpu.pipeline_mode<synchronous>, transform_indices = @transform_6, window_bounds = array<i64: 1, 64>}, {pipeline_mode = #tpu.pipeline_mode<synchronous>, transform_indices = @transform_7, window_bounds = array<i64: 1, 64>}, {pipeline_mode = #tpu.pipeline_mode<synchronous>, transform_indices = @transform_8, window_bounds = array<i64: 64, 32>}, {pipeline_mode = #tpu.pipeline_mode<synchronous>, transform_indices = @transform_9, window_bounds = array<i64: 1, 32>}, {transform_indices = @transform_10, window_bounds = array<i64: 2, 8, 32>}]} {
    %c0 = arith.constant 0 : index
    %c0_0 = arith.constant 0 : index
    %c0_1 = arith.constant 0 : index
    %0 = vector.load %arg1[%c0, %c0_0, %c0_1] : memref<2x8x32xf32, #tpu.memory_space<vmem>>, vector<2x8x32xf32>
    %1 = vector.shape_cast %0 : vector<2x8x32xf32> to vector<16x32xf32>
    %2 = arith.truncf %1 : vector<16x32xf32> to vector<16x32xbf16>
    %c0_2 = arith.constant 0 : index
    %c0_3 = arith.constant 0 : index
    %3 = vector.load %arg2[%c0_2, %c0_3] : memref<32x148xbf16, #tpu.memory_space<vmem>>, vector<32x148xbf16>
    %cst = arith.constant dense<0.000000e+00> : vector<16x148xf32>
    %4 = tpu.matmul %2, %3, %cst {dimension_numbers = #tpu.dot_dimension_numbers<[1], [0], [0], [1], [0, 0, 1, 1], [], []>} : vector<16x32xbf16>, vector<32x148xbf16>, vector<16x148xf32> -> vector<16x148xf32>
    %5 = vector.extract_strided_slice %4 {offsets = [0, 0], sizes = [16, 64], strides = [1, 1]} : vector<16x148xf32> to vector<16x64xf32>
    %6 = vector.extract_strided_slice %4 {offsets = [0, 64], sizes = [16, 80], strides = [1, 1]} : vector<16x148xf32> to vector<16x80xf32>
    %7 = vector.extract_strided_slice %4 {offsets = [0, 144], sizes = [16, 4], strides = [1, 1]} : vector<16x148xf32> to vector<16x4xf32>
    %c0_4 = arith.constant 0 : index
    %c0_5 = arith.constant 0 : index
    %8 = vector.load %arg5[%c0_4, %c0_5] : memref<1x4xf32, #tpu.memory_space<vmem>>, vector<1x4xf32>
    %9 = vector.broadcast %8 : vector<1x4xf32> to vector<16x4xf32>
    %10 = arith.addf %7, %9 : vector<16x4xf32>
    %cst_6 = arith.constant 2.000000e+01 : f32
    %11 = vector.broadcast %cst_6 : f32 to vector<16x4xf32>
    %12 = arith.cmpf ogt, %10, %11 : vector<16x4xf32>
    %cst_7 = arith.constant 2.000000e+01 : f32
    %13 = vector.broadcast %cst_7 : f32 to vector<16x4xf32>
    %14 = arith.minimumf %10, %13 : vector<16x4xf32>
    %15 = math.exp %14 : vector<16x4xf32>
    %16 = math.log1p %15 : vector<16x4xf32>
    %17 = arith.select %12, %10, %16 : vector<16x4xi1>, vector<16x4xf32>
    %18 = vector.shape_cast %6 : vector<16x80xf32> to vector<2x8x80xf32>
    %c0_8 = arith.constant 0 : index
    %c0_9 = arith.constant 0 : index
    %19 = vector.load %arg3[%c0_8, %c0_9] : memref<4x80xf32, #tpu.memory_space<vmem>>, vector<4x80xf32>
    %cst_10 = arith.constant 0.000000e+00 : f32
    %20 = vector.broadcast %cst_10 : f32 to vector<2x3x80xf32>
    %21 = tpu.concatenate %20, %18 in 1 : vector<2x3x80xf32>, vector<2x8x80xf32> -> vector<2x11x80xf32>
    %cst_11 = arith.constant 0.000000e+00 : f32
    %22 = vector.broadcast %cst_11 : f32 to vector<2x8x80xf32>
    %c0_12 = arith.constant 0 : index
    %c0_13 = arith.constant 0 : index
    %23 = vector.load %arg4[%c0_12, %c0_13] : memref<1x80xf32, #tpu.memory_space<vmem>>, vector<1x80xf32>
    %24 = vector.shape_cast %23 : vector<1x80xf32> to vector<1x1x80xf32>
    %25 = vector.broadcast %24 : vector<1x1x80xf32> to vector<2x8x80xf32>
    %26 = arith.addf %22, %25 : vector<2x8x80xf32>
    %27 = vector.extract_strided_slice %21 {offsets = [0, 0, 0], sizes = [2, 8, 80], strides = [1, 1, 1]} : vector<2x11x80xf32> to vector<2x8x80xf32>
    %28 = vector.extract_strided_slice %19 {offsets = [0, 0], sizes = [1, 80], strides = [1, 1]} : vector<4x80xf32> to vector<1x80xf32>
    %29 = vector.shape_cast %28 : vector<1x80xf32> to vector<1x1x80xf32>
    %30 = vector.broadcast %29 : vector<1x1x80xf32> to vector<2x8x80xf32>
    %31 = arith.mulf %27, %30 : vector<2x8x80xf32>
    %32 = arith.addf %26, %31 : vector<2x8x80xf32>
    %33 = vector.extract_strided_slice %21 {offsets = [0, 1, 0], sizes = [2, 8, 80], strides = [1, 1, 1]} : vector<2x11x80xf32> to vector<2x8x80xf32>
    %34 = vector.extract_strided_slice %19 {offsets = [1, 0], sizes = [1, 80], strides = [1, 1]} : vector<4x80xf32> to vector<1x80xf32>
    %35 = vector.shape_cast %34 : vector<1x80xf32> to vector<1x1x80xf32>
    %36 = vector.broadcast %35 : vector<1x1x80xf32> to vector<2x8x80xf32>
    %37 = arith.mulf %33, %36 : vector<2x8x80xf32>
    %38 = arith.addf %32, %37 : vector<2x8x80xf32>
    %39 = vector.extract_strided_slice %21 {offsets = [0, 2, 0], sizes = [2, 8, 80], strides = [1, 1, 1]} : vector<2x11x80xf32> to vector<2x8x80xf32>
    %40 = vector.extract_strided_slice %19 {offsets = [2, 0], sizes = [1, 80], strides = [1, 1]} : vector<4x80xf32> to vector<1x80xf32>
    %41 = vector.shape_cast %40 : vector<1x80xf32> to vector<1x1x80xf32>
    %42 = vector.broadcast %41 : vector<1x1x80xf32> to vector<2x8x80xf32>
    %43 = arith.mulf %39, %42 : vector<2x8x80xf32>
    %44 = arith.addf %38, %43 : vector<2x8x80xf32>
    %45 = vector.extract_strided_slice %21 {offsets = [0, 3, 0], sizes = [2, 8, 80], strides = [1, 1, 1]} : vector<2x11x80xf32> to vector<2x8x80xf32>
    %46 = vector.extract_strided_slice %19 {offsets = [3, 0], sizes = [1, 80], strides = [1, 1]} : vector<4x80xf32> to vector<1x80xf32>
    %47 = vector.shape_cast %46 : vector<1x80xf32> to vector<1x1x80xf32>
    %48 = vector.broadcast %47 : vector<1x1x80xf32> to vector<2x8x80xf32>
    %49 = arith.mulf %45, %48 : vector<2x8x80xf32>
    %50 = arith.addf %44, %49 : vector<2x8x80xf32>
    %cst_14 = arith.constant 5.000000e-01 : f32
    %51 = vector.broadcast %cst_14 : f32 to vector<2x8x80xf32>
    %52 = arith.mulf %51, %50 : vector<2x8x80xf32>
    %53 = math.tanh %52 : vector<2x8x80xf32>
    %cst_15 = arith.constant 1.000000e+00 : f32
    %54 = vector.broadcast %cst_15 : f32 to vector<2x8x80xf32>
    %55 = arith.addf %53, %54 : vector<2x8x80xf32>
    %cst_16 = arith.constant 5.000000e-01 : f32
    %56 = vector.broadcast %cst_16 : f32 to vector<2x8x80xf32>
    %57 = arith.mulf %56, %55 : vector<2x8x80xf32>
    %58 = arith.mulf %50, %57 : vector<2x8x80xf32>
    %59 = vector.extract_strided_slice %58 {offsets = [0, 0, 0], sizes = [2, 8, 64], strides = [1, 1, 1]} : vector<2x8x80xf32> to vector<2x8x64xf32>
    %60 = vector.extract_strided_slice %58 {offsets = [0, 0, 64], sizes = [2, 8, 8], strides = [1, 1, 1]} : vector<2x8x80xf32> to vector<2x8x8xf32>
    %61 = vector.extract_strided_slice %58 {offsets = [0, 0, 72], sizes = [2, 8, 8], strides = [1, 1, 1]} : vector<2x8x80xf32> to vector<2x8x8xf32>
    %62 = vector.shape_cast %17 : vector<16x4xf32> to vector<2x8x4xf32>
    %c0_17 = arith.constant 0 : index
    %c0_18 = arith.constant 0 : index
    %63 = vector.load %arg6[%c0_17, %c0_18] : memref<1x4xf32, #tpu.memory_space<vmem>>, vector<1x4xf32>
    %64 = vector.shape_cast %63 : vector<1x4xf32> to vector<1x1x4xf32>
    %65 = vector.broadcast %64 : vector<1x1x4xf32> to vector<2x8x4xf32>
    %66 = arith.mulf %62, %65 : vector<2x8x4xf32>
    %67 = tpu.iota {dimensions = array<i32: 0>} : vector<8x8xi32>
    %68 = tpu.iota {dimensions = array<i32: 1>} : vector<8x8xi32>
    %69 = arith.cmpi sle, %68, %67 : vector<8x8xi32>
    %cst_19 = arith.constant 1.000000e+00 : f32
    %cst_20 = arith.constant 0.000000e+00 : f32
    %70 = vector.broadcast %cst_19 : f32 to vector<8x8xf32>
    %71 = vector.broadcast %cst_20 : f32 to vector<8x8xf32>
    %72 = arith.select %69, %70, %71 : vector<8x8xi1>, vector<8x8xf32>
    %73 = vector.shape_cast %72 : vector<8x8xf32> to vector<1x8x8xf32>
    %74 = vector.shape_cast %73 : vector<1x8x8xf32> to vector<1x8x8xf32>
    %75 = vector.broadcast %74 : vector<1x8x8xf32> to vector<2x8x8xf32>
    "tpu.trace_start"() <{level = 10 : i32, message = "bts,bsh->bth"}> : () -> ()
    %cst_21 = arith.constant dense<0.000000e+00> : vector<2x8x4xf32>
    %76 = tpu.matmul %75, %66, %cst_21 {dimension_numbers = #tpu.dot_dimension_numbers<[2], [1], [1], [2], [0, 0, 0, 1, 1, 2], [0], [0]>} : vector<2x8x8xf32>, vector<2x8x4xf32>, vector<2x8x4xf32> -> vector<2x8x4xf32>
    "tpu.trace_stop"() : () -> ()
    %77 = tpu.transpose %76, [0, 2, 1] : vector<2x8x4xf32> -> vector<2x4x8xf32>
    %78 = arith.truncf %61 : vector<2x8x8xf32> to vector<2x8x8xbf16>
    %79 = arith.truncf %60 : vector<2x8x8xf32> to vector<2x8x8xbf16>
    "tpu.trace_start"() <{level = 10 : i32, message = "btn,bsn->bts"}> : () -> ()
    %cst_22 = arith.constant dense<0.000000e+00> : vector<2x8x8xf32>
    %80 = tpu.matmul %78, %79, %cst_22 {dimension_numbers = #tpu.dot_dimension_numbers<[2], [2], [1], [1], [0, 0, 0, 1, 1, 1], [0], [0]>} : vector<2x8x8xbf16>, vector<2x8x8xbf16>, vector<2x8x8xf32> -> vector<2x8x8xf32>
    "tpu.trace_stop"() : () -> ()
    %81 = vector.extract_strided_slice %76 {offsets = [0, 0, 0], sizes = [2, 8, 1], strides = [1, 1, 1]} : vector<2x8x4xf32> to vector<2x8x1xf32>
    %82 = vector.extract_strided_slice %77 {offsets = [0, 0, 0], sizes = [2, 1, 8], strides = [1, 1, 1]} : vector<2x4x8xf32> to vector<2x1x8xf32>
    %83 = vector.broadcast %81 : vector<2x8x1xf32> to vector<2x8x8xf32>
    %84 = vector.broadcast %82 : vector<2x1x8xf32> to vector<2x8x8xf32>
    %85 = arith.subf %83, %84 : vector<2x8x8xf32>
    %cst_23 = arith.constant 0.000000e+00 : f32
    %86 = vector.shape_cast %69 : vector<8x8xi1> to vector<1x8x8xi1>
    %87 = vector.broadcast %86 : vector<1x8x8xi1> to vector<2x8x8xi1>
    %88 = vector.broadcast %cst_23 : f32 to vector<2x8x8xf32>
    %89 = arith.select %87, %85, %88 : vector<2x8x8xi1>, vector<2x8x8xf32>
    %90 = math.exp %89 : vector<2x8x8xf32>
    %91 = arith.mulf %80, %90 : vector<2x8x8xf32>
    %cst_24 = arith.constant 0.000000e+00 : f32
    %92 = vector.shape_cast %69 : vector<8x8xi1> to vector<1x8x8xi1>
    %93 = vector.broadcast %92 : vector<1x8x8xi1> to vector<2x8x8xi1>
    %94 = vector.broadcast %cst_24 : f32 to vector<2x8x8xf32>
    %95 = arith.select %93, %91, %94 : vector<2x8x8xi1>, vector<2x8x8xf32>
    %96 = vector.extract_strided_slice %59 {offsets = [0, 0, 0], sizes = [2, 8, 16], strides = [1, 1, 1]} : vector<2x8x64xf32> to vector<2x8x16xf32>
    %97 = vector.extract_strided_slice %62 {offsets = [0, 0, 0], sizes = [2, 8, 1], strides = [1, 1, 1]} : vector<2x8x4xf32> to vector<2x8x1xf32>
    %98 = vector.broadcast %97 : vector<2x8x1xf32> to vector<2x8x16xf32>
    %99 = arith.mulf %96, %98 : vector<2x8x16xf32>
    %100 = arith.truncf %95 : vector<2x8x8xf32> to vector<2x8x8xbf16>
    %101 = arith.truncf %99 : vector<2x8x16xf32> to vector<2x8x16xbf16>
    "tpu.trace_start"() <{level = 10 : i32, message = "bts,bsd->btd"}> : () -> ()
    %cst_25 = arith.constant dense<0.000000e+00> : vector<2x8x16xf32>
    %102 = tpu.matmul %100, %101, %cst_25 {dimension_numbers = #tpu.dot_dimension_numbers<[2], [1], [1], [2], [0, 0, 0, 1, 1, 2], [0], [0]>} : vector<2x8x8xbf16>, vector<2x8x16xbf16>, vector<2x8x16xf32> -> vector<2x8x16xf32>
    "tpu.trace_stop"() : () -> ()
    %103 = vector.extract_strided_slice %76 {offsets = [0, 0, 1], sizes = [2, 8, 1], strides = [1, 1, 1]} : vector<2x8x4xf32> to vector<2x8x1xf32>
    %104 = vector.extract_strided_slice %77 {offsets = [0, 1, 0], sizes = [2, 1, 8], strides = [1, 1, 1]} : vector<2x4x8xf32> to vector<2x1x8xf32>
    %105 = vector.broadcast %103 : vector<2x8x1xf32> to vector<2x8x8xf32>
    %106 = vector.broadcast %104 : vector<2x1x8xf32> to vector<2x8x8xf32>
    %107 = arith.subf %105, %106 : vector<2x8x8xf32>
    %cst_26 = arith.constant 0.000000e+00 : f32
    %108 = vector.shape_cast %69 : vector<8x8xi1> to vector<1x8x8xi1>
    %109 = vector.broadcast %108 : vector<1x8x8xi1> to vector<2x8x8xi1>
    %110 = vector.broadcast %cst_26 : f32 to vector<2x8x8xf32>
    %111 = arith.select %109, %107, %110 : vector<2x8x8xi1>, vector<2x8x8xf32>
    %112 = math.exp %111 : vector<2x8x8xf32>
    %113 = arith.mulf %80, %112 : vector<2x8x8xf32>
    %cst_27 = arith.constant 0.000000e+00 : f32
    %114 = vector.shape_cast %69 : vector<8x8xi1> to vector<1x8x8xi1>
    %115 = vector.broadcast %114 : vector<1x8x8xi1> to vector<2x8x8xi1>
    %116 = vector.broadcast %cst_27 : f32 to vector<2x8x8xf32>
    %117 = arith.select %115, %113, %116 : vector<2x8x8xi1>, vector<2x8x8xf32>
    %118 = vector.extract_strided_slice %59 {offsets = [0, 0, 16], sizes = [2, 8, 16], strides = [1, 1, 1]} : vector<2x8x64xf32> to vector<2x8x16xf32>
    %119 = vector.extract_strided_slice %62 {offsets = [0, 0, 1], sizes = [2, 8, 1], strides = [1, 1, 1]} : vector<2x8x4xf32> to vector<2x8x1xf32>
    %120 = vector.broadcast %119 : vector<2x8x1xf32> to vector<2x8x16xf32>
    %121 = arith.mulf %118, %120 : vector<2x8x16xf32>
    %122 = arith.truncf %117 : vector<2x8x8xf32> to vector<2x8x8xbf16>
    %123 = arith.truncf %121 : vector<2x8x16xf32> to vector<2x8x16xbf16>
    "tpu.trace_start"() <{level = 10 : i32, message = "bts,bsd->btd"}> : () -> ()
    %cst_28 = arith.constant dense<0.000000e+00> : vector<2x8x16xf32>
    %124 = tpu.matmul %122, %123, %cst_28 {dimension_numbers = #tpu.dot_dimension_numbers<[2], [1], [1], [2], [0, 0, 0, 1, 1, 2], [0], [0]>} : vector<2x8x8xbf16>, vector<2x8x16xbf16>, vector<2x8x16xf32> -> vector<2x8x16xf32>
    "tpu.trace_stop"() : () -> ()
    %125 = vector.extract_strided_slice %76 {offsets = [0, 0, 2], sizes = [2, 8, 1], strides = [1, 1, 1]} : vector<2x8x4xf32> to vector<2x8x1xf32>
    %126 = vector.extract_strided_slice %77 {offsets = [0, 2, 0], sizes = [2, 1, 8], strides = [1, 1, 1]} : vector<2x4x8xf32> to vector<2x1x8xf32>
    %127 = vector.broadcast %125 : vector<2x8x1xf32> to vector<2x8x8xf32>
    %128 = vector.broadcast %126 : vector<2x1x8xf32> to vector<2x8x8xf32>
    %129 = arith.subf %127, %128 : vector<2x8x8xf32>
    %cst_29 = arith.constant 0.000000e+00 : f32
    %130 = vector.shape_cast %69 : vector<8x8xi1> to vector<1x8x8xi1>
    %131 = vector.broadcast %130 : vector<1x8x8xi1> to vector<2x8x8xi1>
    %132 = vector.broadcast %cst_29 : f32 to vector<2x8x8xf32>
    %133 = arith.select %131, %129, %132 : vector<2x8x8xi1>, vector<2x8x8xf32>
    %134 = math.exp %133 : vector<2x8x8xf32>
    %135 = arith.mulf %80, %134 : vector<2x8x8xf32>
    %cst_30 = arith.constant 0.000000e+00 : f32
    %136 = vector.shape_cast %69 : vector<8x8xi1> to vector<1x8x8xi1>
    %137 = vector.broadcast %136 : vector<1x8x8xi1> to vector<2x8x8xi1>
    %138 = vector.broadcast %cst_30 : f32 to vector<2x8x8xf32>
    %139 = arith.select %137, %135, %138 : vector<2x8x8xi1>, vector<2x8x8xf32>
    %140 = vector.extract_strided_slice %59 {offsets = [0, 0, 32], sizes = [2, 8, 16], strides = [1, 1, 1]} : vector<2x8x64xf32> to vector<2x8x16xf32>
    %141 = vector.extract_strided_slice %62 {offsets = [0, 0, 2], sizes = [2, 8, 1], strides = [1, 1, 1]} : vector<2x8x4xf32> to vector<2x8x1xf32>
    %142 = vector.broadcast %141 : vector<2x8x1xf32> to vector<2x8x16xf32>
    %143 = arith.mulf %140, %142 : vector<2x8x16xf32>
    %144 = arith.truncf %139 : vector<2x8x8xf32> to vector<2x8x8xbf16>
    %145 = arith.truncf %143 : vector<2x8x16xf32> to vector<2x8x16xbf16>
    "tpu.trace_start"() <{level = 10 : i32, message = "bts,bsd->btd"}> : () -> ()
    %cst_31 = arith.constant dense<0.000000e+00> : vector<2x8x16xf32>
    %146 = tpu.matmul %144, %145, %cst_31 {dimension_numbers = #tpu.dot_dimension_numbers<[2], [1], [1], [2], [0, 0, 0, 1, 1, 2], [0], [0]>} : vector<2x8x8xbf16>, vector<2x8x16xbf16>, vector<2x8x16xf32> -> vector<2x8x16xf32>
    "tpu.trace_stop"() : () -> ()
    %147 = vector.extract_strided_slice %76 {offsets = [0, 0, 3], sizes = [2, 8, 1], strides = [1, 1, 1]} : vector<2x8x4xf32> to vector<2x8x1xf32>
    %148 = vector.extract_strided_slice %77 {offsets = [0, 3, 0], sizes = [2, 1, 8], strides = [1, 1, 1]} : vector<2x4x8xf32> to vector<2x1x8xf32>
    %149 = vector.broadcast %147 : vector<2x8x1xf32> to vector<2x8x8xf32>
    %150 = vector.broadcast %148 : vector<2x1x8xf32> to vector<2x8x8xf32>
    %151 = arith.subf %149, %150 : vector<2x8x8xf32>
    %cst_32 = arith.constant 0.000000e+00 : f32
    %152 = vector.shape_cast %69 : vector<8x8xi1> to vector<1x8x8xi1>
    %153 = vector.broadcast %152 : vector<1x8x8xi1> to vector<2x8x8xi1>
    %154 = vector.broadcast %cst_32 : f32 to vector<2x8x8xf32>
    %155 = arith.select %153, %151, %154 : vector<2x8x8xi1>, vector<2x8x8xf32>
    %156 = math.exp %155 : vector<2x8x8xf32>
    %157 = arith.mulf %80, %156 : vector<2x8x8xf32>
    %cst_33 = arith.constant 0.000000e+00 : f32
    %158 = vector.shape_cast %69 : vector<8x8xi1> to vector<1x8x8xi1>
    %159 = vector.broadcast %158 : vector<1x8x8xi1> to vector<2x8x8xi1>
    %160 = vector.broadcast %cst_33 : f32 to vector<2x8x8xf32>
    %161 = arith.select %159, %157, %160 : vector<2x8x8xi1>, vector<2x8x8xf32>
    %162 = vector.extract_strided_slice %59 {offsets = [0, 0, 48], sizes = [2, 8, 16], strides = [1, 1, 1]} : vector<2x8x64xf32> to vector<2x8x16xf32>
    %163 = vector.extract_strided_slice %62 {offsets = [0, 0, 3], sizes = [2, 8, 1], strides = [1, 1, 1]} : vector<2x8x4xf32> to vector<2x8x1xf32>
    %164 = vector.broadcast %163 : vector<2x8x1xf32> to vector<2x8x16xf32>
    %165 = arith.mulf %162, %164 : vector<2x8x16xf32>
    %166 = arith.truncf %161 : vector<2x8x8xf32> to vector<2x8x8xbf16>
    %167 = arith.truncf %165 : vector<2x8x16xf32> to vector<2x8x16xbf16>
    "tpu.trace_start"() <{level = 10 : i32, message = "bts,bsd->btd"}> : () -> ()
    %cst_34 = arith.constant dense<0.000000e+00> : vector<2x8x16xf32>
    %168 = tpu.matmul %166, %167, %cst_34 {dimension_numbers = #tpu.dot_dimension_numbers<[2], [1], [1], [2], [0, 0, 0, 1, 1, 2], [0], [0]>} : vector<2x8x8xbf16>, vector<2x8x16xbf16>, vector<2x8x16xf32> -> vector<2x8x16xf32>
    "tpu.trace_stop"() : () -> ()
    %169 = tpu.concatenate %102, %124, %146, %168 in 2 : vector<2x8x16xf32>, vector<2x8x16xf32>, vector<2x8x16xf32>, vector<2x8x16xf32> -> vector<2x8x64xf32>
    %c0_35 = arith.constant 0 : index
    %c0_36 = arith.constant 0 : index
    %170 = vector.load %arg7[%c0_35, %c0_36] : memref<1x64xf32, #tpu.memory_space<vmem>>, vector<1x64xf32>
    %171 = vector.shape_cast %170 : vector<1x64xf32> to vector<1x1x64xf32>
    %172 = vector.broadcast %171 : vector<1x1x64xf32> to vector<2x8x64xf32>
    %173 = arith.mulf %172, %59 : vector<2x8x64xf32>
    %174 = arith.addf %169, %173 : vector<2x8x64xf32>
    %175 = vector.shape_cast %174 : vector<2x8x64xf32> to vector<16x64xf32>
    %cst_37 = arith.constant 5.000000e-01 : f32
    %176 = vector.broadcast %cst_37 : f32 to vector<16x64xf32>
    %177 = arith.mulf %176, %5 : vector<16x64xf32>
    %178 = math.tanh %177 : vector<16x64xf32>
    %cst_38 = arith.constant 1.000000e+00 : f32
    %179 = vector.broadcast %cst_38 : f32 to vector<16x64xf32>
    %180 = arith.addf %178, %179 : vector<16x64xf32>
    %cst_39 = arith.constant 5.000000e-01 : f32
    %181 = vector.broadcast %cst_39 : f32 to vector<16x64xf32>
    %182 = arith.mulf %181, %180 : vector<16x64xf32>
    %183 = arith.mulf %5, %182 : vector<16x64xf32>
    %184 = arith.mulf %175, %183 : vector<16x64xf32>
    %185 = arith.mulf %184, %184 : vector<16x64xf32>
    %cst_40 = arith.constant dense<0.000000e+00> : vector<16xf32>
    %186 = vector.multi_reduction <add>, %185, %cst_40 [1] : vector<16x64xf32> to vector<16xf32>
    %187 = vector.shape_cast %186 : vector<16xf32> to vector<16x1xf32>
    %cst_41 = arith.constant 6.400000e+01 : f32
    %188 = vector.broadcast %cst_41 : f32 to vector<16x1xf32>
    %189 = arith.divf %187, %188 : vector<16x1xf32>
    %cst_42 = arith.constant 9.99999974E-6 : f32
    %190 = vector.broadcast %cst_42 : f32 to vector<16x1xf32>
    %191 = arith.addf %189, %190 : vector<16x1xf32>
    %192 = math.rsqrt %191 : vector<16x1xf32>
    %193 = vector.broadcast %192 : vector<16x1xf32> to vector<16x64xf32>
    %194 = arith.mulf %184, %193 : vector<16x64xf32>
    %c0_43 = arith.constant 0 : index
    %c0_44 = arith.constant 0 : index
    %195 = vector.load %arg8[%c0_43, %c0_44] : memref<1x64xf32, #tpu.memory_space<vmem>>, vector<1x64xf32>
    %196 = vector.broadcast %195 : vector<1x64xf32> to vector<16x64xf32>
    %197 = arith.mulf %194, %196 : vector<16x64xf32>
    %198 = arith.truncf %197 : vector<16x64xf32> to vector<16x64xbf16>
    %c0_45 = arith.constant 0 : index
    %c0_46 = arith.constant 0 : index
    %199 = vector.load %arg9[%c0_45, %c0_46] : memref<64x32xbf16, #tpu.memory_space<vmem>>, vector<64x32xbf16>
    %cst_47 = arith.constant dense<0.000000e+00> : vector<16x32xf32>
    %200 = tpu.matmul %198, %199, %cst_47 {dimension_numbers = #tpu.dot_dimension_numbers<[1], [0], [0], [1], [0, 0, 1, 1], [], []>} : vector<16x64xbf16>, vector<64x32xbf16>, vector<16x32xf32> -> vector<16x32xf32>
    %c0_48 = arith.constant 0 : index
    %c0_49 = arith.constant 0 : index
    %201 = vector.load %arg10[%c0_48, %c0_49] : memref<1x32xf32, #tpu.memory_space<vmem>>, vector<1x32xf32>
    %202 = vector.broadcast %201 : vector<1x32xf32> to vector<16x32xf32>
    %203 = arith.addf %200, %202 : vector<16x32xf32>
    %204 = vector.shape_cast %203 : vector<16x32xf32> to vector<2x8x32xf32>
    %c0_50 = arith.constant 0 : index
    %c0_51 = arith.constant 0 : index
    %c0_52 = arith.constant 0 : index
    %205 = vector.load %arg11[%c0_50, %c0_51, %c0_52] : memref<2x8x32xf32, #tpu.memory_space<vmem>>, vector<2x8x32xf32>
    tpu.vector_store %arg11[%c0_50, %c0_51, %c0_52], %204 {strides = array<i32>} : memref<2x8x32xf32, #tpu.memory_space<vmem>>, vector<2x8x32xf32>,
    return
  }
  func.func @transform_0(%arg0: i32) -> (i32, i32, i32) {
    %c0_i32 = arith.constant 0 : i32
    %c0_i32_0 = arith.constant 0 : i32
    %c0_i32_1 = arith.constant 0 : i32
    return %arg0, %c0_i32, %c0_i32_0 : i32, i32, i32
  }
  func.func @transform_1(%arg0: i32) -> (i32, i32) {
    %c0_i32 = arith.constant 0 : i32
    %c0_i32_0 = arith.constant 0 : i32
    %c0_i32_1 = arith.constant 0 : i32
    return %c0_i32, %c0_i32_0 : i32, i32
  }
  func.func @transform_2(%arg0: i32) -> (i32, i32) {
    %c0_i32 = arith.constant 0 : i32
    %c0_i32_0 = arith.constant 0 : i32
    %c0_i32_1 = arith.constant 0 : i32
    return %c0_i32, %c0_i32_0 : i32, i32
  }
  func.func @transform_3(%arg0: i32) -> (i32, i32) {
    %c0_i32 = arith.constant 0 : i32
    %c0_i32_0 = arith.constant 0 : i32
    %c0_i32_1 = arith.constant 0 : i32
    return %c0_i32, %c0_i32_0 : i32, i32
  }
  func.func @transform_4(%arg0: i32) -> (i32, i32) {
    %c0_i32 = arith.constant 0 : i32
    %c0_i32_0 = arith.constant 0 : i32
    %c0_i32_1 = arith.constant 0 : i32
    return %c0_i32, %c0_i32_0 : i32, i32
  }
  func.func @transform_5(%arg0: i32) -> (i32, i32) {
    %c0_i32 = arith.constant 0 : i32
    %c0_i32_0 = arith.constant 0 : i32
    %c0_i32_1 = arith.constant 0 : i32
    return %c0_i32, %c0_i32_0 : i32, i32
  }
  func.func @transform_6(%arg0: i32) -> (i32, i32) {
    %c0_i32 = arith.constant 0 : i32
    %c0_i32_0 = arith.constant 0 : i32
    %c0_i32_1 = arith.constant 0 : i32
    return %c0_i32, %c0_i32_0 : i32, i32
  }
  func.func @transform_7(%arg0: i32) -> (i32, i32) {
    %c0_i32 = arith.constant 0 : i32
    %c0_i32_0 = arith.constant 0 : i32
    %c0_i32_1 = arith.constant 0 : i32
    return %c0_i32, %c0_i32_0 : i32, i32
  }
  func.func @transform_8(%arg0: i32) -> (i32, i32) {
    %c0_i32 = arith.constant 0 : i32
    %c0_i32_0 = arith.constant 0 : i32
    %c0_i32_1 = arith.constant 0 : i32
    return %c0_i32, %c0_i32_0 : i32, i32
  }
  func.func @transform_9(%arg0: i32) -> (i32, i32) {
    %c0_i32 = arith.constant 0 : i32
    %c0_i32_0 = arith.constant 0 : i32
    %c0_i32_1 = arith.constant 0 : i32
    return %c0_i32, %c0_i32_0 : i32, i32
  }
  func.func @transform_10(%arg0: i32) -> (i32, i32, i32) {
    %c0_i32 = arith.constant 0 : i32
    %c0_i32_0 = arith.constant 0 : i32
    %c0_i32_1 = arith.constant 0 : i32
    return %arg0, %c0_i32, %c0_i32_0 : i32, i32, i32
  }
}

</mosaic_0001>

<bundles_post_ra>
// kernel: tpu_custom_call.1
= control target key start
LH: loop header
LB: loop body
LE: loop exit
PB: predicated region body
PF: predicated region fallthrough
CT: control target
= control target key end

     0   :  { %15 = vsyncpa [#allocation3], 0  ;;  %s2628_s0 = inlined_call_operand.vmem [shape: f32[4,8,32], index: 0, kind: input, shape index: {}]   ;;  %s2629_s1 = inlined_call_operand.hbm [shape: bf16[32,148], index: 1, kind: input, shape index: {}]   ;;  %s2630_s2 = inlined_call_operand.vmem [shape: f32[4,80], index: 2, kind: input, shape index: {}]   ;;  %s2631_s3 = inlined_call_operand.vmem [shape: f32[1,80], index: 3, kind: input, shape index: {}]   ;;  %s2632_s4 = inlined_call_operand.vmem [shape: f32[1,4], index: 4, kind: input, shape index: {}]   ;;  %s2633_s5 = inlined_call_operand.vmem [shape: f32[1,4], index: 5, kind: input, shape index: {}]   ;;  %s2634_s6 = inlined_call_operand.vmem [shape: f32[1,64], index: 6, kind: input, shape index: {}]   ;;  %s2635_s7 = inlined_call_operand.vmem [shape: f32[1,64], index: 7, kind: input, shape index: {}]   ;;  %s2636_s8 = inlined_call_operand.vmem [shape: bf16[64,32], index: 8, kind: input, shape index: {}]   ;;  %s2637_s9 = inlined_call_operand.vmem [shape: f32[1,32], index: 9, kind: input, shape index: {}]   ;;  %s2638_s10 = inlined_call_operand.hbm [shape: f32[4,8,32], index: 10, kind: output, shape index: {}]  }
   0x1   :  { %16 = vsyncpa [#allocation4], 0 }
   0x2   :  { %18 = vsyncpa [#allocation4 + $0x1], 0  ;;  %s2225_s13 = smov 0   ;;  %s2227_s14 = smov 0  }
   0x3   :  { %s2229_s15 = smov 0   ;;  %s2231_s16 = smov 0  }
   0x4 LB: > { %s2246_s17 = sadd.s32 4294967295, %s2144_s16   ;;  %s1763_s18 = sadd.s32 4294967294, %s2144_s16   ;;  %s2144_s16 = sphi %s2231_s16, %s2656_s16   ;;  %s2140_s15 = sphi %s2229_s15, %s2655_s15   ;;  %s2136_s14 = sphi %s2227_s14, %s2654_s14   ;;  %s2132_s13 = sphi %s2225_s13, %s2653_s13  }
   0x5   : > { %s2250_s19 = sadd.s32 1, %s2144_s16   ;;  %s246_s20 = sadd.s32 1, %s2140_s15 }
   0x6   : > { %s243_s21 = ssub.s32 %s2144_s16, %s2250_s19  ;;  %p256_p0 = scmp.ne.s32.totalorder %s2140_s15, %s2136_s14 }
   0x7   : > { %p244_p1 = scmp.eq.s32.totalorder %s243_s21, 0  ;;  %p257_p2 = scmp.eq.s32.totalorder %s2246_s17, 1 }
   0x8   : > { %p262_p3 = scmp.ne.s32.totalorder %s2136_s14, %s2132_s13  ;;  %p263_p4 = scmp.eq.s32.totalorder %s1763_s18, 1 }
   0x9   : > { %s2261_s22 = scalar_select %p244_p1, %s2140_s15, %s246_s20  }
   0xa   : > { %p2263_p5 = por %p257_p2, %p256_p0  ;;  %p2267_p6 = por %p263_p4, %p262_p3 }
   0xb   : > { %p1764_p7 = scmp.ge.s32.totalorder %s2144_s16, 1  ;;  %p270_p8 = scmp.lt.s32.totalorder %s2144_s16, 3 }
   0xc   : > { %s2642_s23 = scalar_select %p2263_p5, 1, 0 }
   0xd   : > { %s2643_s24 = scalar_select %p2267_p6, 1, 0 }
   0xe   : > { %p2639_p9 = scmp.eq.s32.totalorder %s2246_s17, 0  ;;  %p2274_p10 = pnand %p1764_p7, %p270_p8 }
   0xf   : > { %s2146_s26 = smov [#allocation2]   ;;  %s2050_s11 = scalar_lea.hbm %s2629_s1, 512 }
  0x10   : > { %s2644_s25 = scalar_select %p2274_p10, 1, 0 }
  0x11   : > { %s282_s27 = sshll.u32 %s2146_s26, 4  ;;  %p1923_p11 = pneg %p2274_p10  ;;  %s283_s27 = int_to_ptr.vmem [resolvable:$true] %s282_s27 }
  0x12   : > { %p2051_p13 = scmp.ne.s32.totalorder %s2629_s1, %s2050_s11  ;;  %p2057_p3 = scmp.lt.u32.totalorder %s2050_s11, %s2629_s1 }
  0x13   : > { %p2282_p12 = pnand %p2639_p9, %p1923_p11 }
  0x15   : > { %p2052_p0 = pneg %p2282_p12 }
  0x17   : > { %p2053_p1 = pnand %p2052_p0, %p2051_p13 }
  0x19   : > { %p2054_p2 = pneg %p2053_p1 }
  0x1b   : > { %p2059_p4 = pnand %p2057_p3, %p2054_p2 }
  0x1d   : > { %2062 = shalt.err (!%p2059_p4)
}
  0x1e   : > { %s2063_s26 = scalar_lea.vmem %s283_s27, 512  ;;  %p2071_p9 = scmp.lt.s32.totalorder %s283_s27, %s283_s27 }
  0x1f   : > { %p2064_p7 = scmp.ne.s32.totalorder %s283_s27, %s2063_s26  ;;  %p2072_p6 = scmp.lt.s32.totalorder %s2063_s26, %s2063_s26 }
  0x21   : > { %p2066_p8 = pnand %p2064_p7, %p2052_p0  ;;  %p2073_p5 = por %p2072_p6, %p2071_p9 }
  0x23   : > { %p2067_p11 = pneg %p2066_p8 }
  0x25   : > { %p2074_p10 = pnand %p2073_p5, %p2067_p11 }
  0x27   : > { %2077 = shalt.err (!%p2074_p10)
}
  0x28   : > { %s2147_s29 = smov 128   ;;  %s2148_s30 = smov 8  }
  0x29   : > { %1926 = dma.hbm_to_vmem [thread:$0]  (!%p2282_p12), %s2629_s1, 512, %s283_s27, [#allocation3], %s2147_s29, %s2147_s29, %s2148_s30  }
  0x2a   : > { %p2646_p13 = scmp.ne.s32.totalorder %s2644_s25, 0 }
  0x2b   : > { %p2647_p1 = scmp.eq.s32.totalorder (!%p2646_p13), %s2246_s17, 0 }
  0x2c   : > { %331 = sbr.rel (%p2646_p13) target bundleno = 1599 (0x63f), region = 60 }
  0x33   : > { %2123 = dma.done.wait (%p2647_p1), [#allocation3], 512   ;;  %p2648_p0 = pmov %p2647_p1 }
  0x34   : > { %s1770_s11 = sshll.u32 %s2246_s17, 1  ;;  %v2149_v0 = vmov 0   ;;  %v2004_v1 = vld [vmem:[#allocation2 + $0x4] ss:$8 sps:$4 sm:$0xff]   ;;  %v2006_v2 = vld [vmem:[#allocation2] ss:$8 sps:$4 sm:$0xff]   ;;  %v523_v50 = vlaneseq }
  0x35   : > { %2125 = vsyncadd (%p2648_p0), [#allocation3], 4294966784  ;;  %440 = vmatprep.mubr.bf16.mxu0 %v2149_v0  ;;  %p370_p5 = scmp.lt.s32.totalorder %s1770_s11, 3  ;;  %408 = vmatprep.subr.bf16.mxu0 %v2004_v1  ;;  %v2007_v3 = vld [vmem:[#allocation2 + $0x14] ss:$8 sps:$4 sm:$0xff]   ;;  %s2150_s12 = smov 16  }
  0x36   : > { %v2009_v4 = vld [vmem:[#allocation2 + $0x10] ss:$8 sps:$4 sm:$0xff]   ;;  %409 = vmatpush1.bf16.msra.mxu0 %v2006_v2  ;;  %v1777_v7 = vld [vmem:[%s2632_s4] ss:$0 sm:$0xff]  ;;  %vm404_vm0 = vcmask 261120   ;;  %s2151_s18 = smov 64  }
  0x37   : > { %s2658_s11 = smov (!%p370_p5, %s1770_s11), 3  ;;  %v1779_v8 = vld [vmem:[%s2633_s5] ss:$0 sm:$0xff]  ;;  %410 = vmatprep.subr.bf16.mxu0 %v2007_v3  ;;  %457 = vrot.lane.b32.xlu0 %v1777_v7, %s2150_s12  ;;  %v2152_v31 = vmov 0.0   ;;  %vm2153_vm1 = vmmov 0   ;;  %v2154_v44 = vmov 17  }
  0x38   : > { %s1771_s28 = sshll.u32 %s2658_s11, 3  ;;  %1835 = vmatprep.subr.mxu1 %v2152_v31  ;;  %1837 = vmatprep.mubr.msk.f32.mxu1 %vm2153_vm1, %v2152_v31  ;;  %s2155_s11 = smov 112   ;;  %v2347_v51 = vshrl.u32 %v523_v50, 7  ;;  %v490_v55 = vld [vmem:[%s2630_s2] sm:$0xf]  ;;  %vm507_vm6 = vcmask 523264  }
  0x39   : > { %s373_s27 = scalar_lea.vmem %s2628_s0, %s1771_s28  ;;  %1990 = vset.pattern.permute.xlu1 %v2154_v44  ;;  %1989 = vset.pattern.permute.xlu0 %v2154_v44  ;;  %vm512_vm7 = vcmask 1042432   ;;  %v1778_v1 = vld [vmem:[%s2631_s3] ss:$0 sm:$0xff]  ;;  %vm543_vm8 = vcmask 1046528   ;;  %vm566_vm9 = vcmask 1045504   ;;  %vm589_vm10 = vcmask 1044480  }
  0x3a   : > { %v377_v5 = vld [vmem:[%s373_s27] sm:$0xff]  ;;  %v378_v6 = vld [vmem:[%s373_s27 + $0x8] sm:$0xff]  ;;  %411 = vmatpush1.bf16.msra.mxu0 %v2009_v4  ;;  %v2350_v52 = vsub.s32 1, %v2347_v51  ;;  %v2353_v53 = vsub.s32 2, %v2347_v51  ;;  %v2356_v54 = vsub.s32 3, %v2347_v51  ;;  %v2362_v56 = vsub.s32 0, %v2347_v51 }
  0x3b   : > { %v379_v9 = vpack.c.bf16 %v378_v6, %v377_v5  ;;  %616 = vrot.lane.b32.xlu0 %v1779_v8, %s2150_s12  ;;  %1845 = vmatprep.subr.bf16.mxu0 %v2152_v31  ;;  %vm631_vm12 = vcmask 64512   ;;  %s2156_s25 = smov 56   ;;  %vm998_vm13 = vcmask 1043456   ;;  %s2163_s26 = smov 80   ;;  %vm1532_vm14 = vcmask 130048  }
  0x3c   : > { %v534_v58 = vrot.slane %v490_v55, %v2350_v52  ;;  %v557_v59 = vrot.slane %v490_v55, %v2353_v53  ;;  %v580_v60 = vrot.slane %v490_v55, %v2356_v54  ;;  %v526_v61 = vrot.slane %v490_v55, %v2362_v56  ;;  %s2164_s29 = smov 96   ;;  %s2165_s30 = smov 32  }
  0x3d   : > { %1776 = vmatmul.mubr.msk.bf16.vlgmr.msra.gmra.mrb[0].mxu0 %vm404_vm0, %v379_v9  ;;  %vm1537_vm15 = vcmask 392192   ;;  %p2651_p9 = scmp.ne.s32.totalorder %s2642_s23, 0 }
  0x3e   : > { %1847 = vmatprep.mubr.msk.bf16.mxu0 %vm2153_vm1, %v2152_v31 }
  0xa9   : > { %v458_v10 = vpop.permute.xlu0 %457 }
  0xad   : > { %v617_v40 = vpop.permute.xlu0 %616 }
 0x110   : > { %v2322_v11 = vpop.f32.mrb[0].mxu0 }
 0x111   : > { %v444_v12 = vpop.f32.mrb[1].mxu0  ;;  %v495_v13 = vrot.slane %v2322_v11, 5 }
 0x112   : > { %v460_v14 = vadd.f32 %v458_v10, %v444_v12  ;;  %v2325_v15 = vpop.f32.mrb[2].mxu0  ;;  %v496_v20 = vrot.slane %v444_v12, 5 }
 0x113   : > { %v497_v16 = vrot.slane %v2325_v15, 5  ;;  %499 = vrot.lane.b32.xlu1 %v495_v13, %s2151_s18  ;;  %v448_v17 = vpop.f32.mrb[3].mxu0 }
 0x114   : > { %v464_v18 = vmin.f32 %v460_v14, 20.0  ;;  %v461_v19 = vadd.f32 %v458_v10, %v448_v17  ;;  %v498_v24 = vrot.slane %v448_v17, 5  ;;  %vm462_vm3 = vcmp.gt.f32.partialorder %v460_v14, 20.0 }
 0x115   : > { %503 = vrot.lane.b32.xlu0 %v497_v16, %s2151_s18 }
 0x116   : > { %v466_v21 = vmul.f32 1.442695, %v464_v18  ;;  %v465_v22 = vmin.f32 %v461_v19, 20.0  ;;  %vm463_vm5 = vcmp.gt.f32.partialorder %v461_v19, 20.0 }
 0x117   : > { %501 = vrot.lane.b32.xlu1 %v496_v20, %s2151_s18 }
 0x118   : > { %2014 = vpow2.f32 %v466_v21  ;;  %v468_v23 = vmul.f32 1.442695, %v465_v22 }
 0x11a   : > { %2016 = vpow2.f32 %v468_v23 }
 0x11b   : > { %505 = vrot.lane.b32.xlu1 %v498_v24, %s2151_s18 }
 0x122   : > { %v2015_v25 = vpop.eup %2014 }
 0x123   : > { %v470_v26 = vadd.f32 1.0, %v2015_v25  ;;  %v473_v29 = vmul.f32 -0.5, %v2015_v25  ;;  %v476_v33 = vand.u32 2147483647, %v2015_v25 }
 0x124   : > { %v2017_v27 = vpop.eup %2016 }
 0x125   : > { %2018 = vlog2.f32 %v470_v26  ;;  %v479_v28 = vadd.f32 1.0, %v2017_v27  ;;  %v482_v30 = vmul.f32 -0.5, %v2017_v27  ;;  %v474_v32 = vadd.f32 1.0, %v473_v29 }
 0x126   : > { %v485_v36 = vand.u32 2147483647, %v2017_v27  ;;  %vm477_vm2 = vcmp.lt.f32.partialorder %v476_v33, 0.0004427343 }
 0x127   : > { %2020 = vlog2.f32 %v479_v28  ;;  %v483_v34 = vadd.f32 1.0, %v482_v30  ;;  %v475_v38 = vmul.f32 %v2015_v25, %v474_v32 }
 0x128   : > { %vm486_vm4 = vcmp.lt.f32.partialorder %v485_v36, 0.0004427343 }
 0x129   : > { %v484_v43 = vmul.f32 %v2017_v27, %v483_v34 }
 0x12f   : > { %v2019_v35 = vpop.eup %2018 }
 0x130   : > { %v472_v37 = vmul.f32 0.6931472, %v2019_v35 }
 0x131   : > { %v2021_v39 = vpop.eup %2020 }
 0x132   : > { %v478_v41 = vsel %vm477_vm2, %v475_v38, %v472_v37  ;;  %v481_v42 = vmul.f32 0.6931472, %v2021_v39 }
 0x133   : > { %v2338_v45 = vsel %vm462_vm3, %v460_v14, %v478_v41 }
 0x134   : > { %v487_v46 = vsel %vm486_vm4, %v484_v43, %v481_v42  ;;  %v619_v47 = vmul.f32 %v617_v40, %v2338_v45 }
 0x135   : > { %v2341_v48 = vsel %vm463_vm5, %v461_v19, %v487_v46 }
 0x136   : > { %v620_v49 = vmul.f32 %v617_v40, %v2341_v48  ;;  %628 = vrot.lane.b32.xlu0 %v619_v47, %s2155_s11 }
 0x138   : > { %706 = vrot.lane.b32.xlu1 %v620_v49, %s2155_s11 }
 0x185   : > { %v500_v57 = vpop.permute.xlu1 %499 }
 0x187   : > { %v504_v14 = vpop.permute.xlu0 %503 }
 0x189   : > { %v502_v62 = vpop.permute.xlu1 %501 }
 0x18a   : > { %v508_v63 = vsel %vm507_vm6, %v500_v57, %v502_v62 }
 0x18b   : > { %v513_v2 = vsel %vm512_vm7, 0.0, %v508_v63  ;;  %v536_v3 = vmul.f32 %v534_v58, %v508_v63  ;;  %v559_v4 = vmul.f32 %v557_v59, %v508_v63  ;;  %v582_v5 = vmul.f32 %v580_v60, %v508_v63 }
 0x18c   : > { %v527_v6 = vmul.f32 %v526_v61, %v513_v2  ;;  %v535_v7 = vmul.f32 %v534_v58, %v513_v2  ;;  %v558_v8 = vmul.f32 %v557_v59, %v513_v2  ;;  %v581_v9 = vmul.f32 %v580_v60, %v513_v2 }
 0x18d   : > { %v545_v10 = vrot.slane %v536_v3, 1  ;;  %v568_v12 = vrot.slane %v559_v4, 2  ;;  %v506_v13 = vpop.permute.xlu1 %505  ;;  %v591_v19 = vrot.slane %v582_v5, 3 }
 0x18e   : > { %v529_v16 = vadd.f32 %v1778_v1, %v527_v6  ;;  %v544_v17 = vrot.slane %v535_v7, 1  ;;  %v567_v18 = vrot.slane %v558_v8, 2  ;;  %v509_v20 = vsel %vm507_vm6, %v504_v14, %v506_v13 }
 0x18f   : > { %v590_v23 = vrot.slane %v581_v9, 3  ;;  %v514_v24 = vsel %vm512_vm7, 0.0, %v509_v20  ;;  %v538_v28 = vmul.f32 %v534_v58, %v509_v20  ;;  %v561_v30 = vmul.f32 %v557_v59, %v509_v20 }
 0x190   : > { %v546_v21 = vsel %vm543_vm8, %v544_v17, %v545_v10  ;;  %v569_v22 = vsel %vm566_vm9, %v567_v18, %v568_v12  ;;  %v528_v26 = vmul.f32 %v526_v61, %v514_v24  ;;  %v537_v27 = vmul.f32 %v534_v58, %v514_v24 }
 0x191   : > { %v552_v25 = vadd.f32 %v546_v21, %v529_v16  ;;  %v560_v29 = vmul.f32 %v557_v59, %v514_v24  ;;  %v583_v32 = vmul.f32 %v580_v60, %v514_v24  ;;  %v584_v33 = vmul.f32 %v580_v60, %v509_v20 }
 0x192   : > { %v530_v35 = vadd.f32 %v1778_v1, %v528_v26  ;;  %v547_v36 = vrot.slane %v537_v27, 1  ;;  %v548_v37 = vrot.slane %v538_v28, 1  ;;  %v592_v38 = vsel %vm589_vm10, %v590_v23, %v591_v19 }
 0x193   : > { %v575_v34 = vadd.f32 %v569_v22, %v552_v25  ;;  %v570_v39 = vrot.slane %v560_v29, 2  ;;  %v571_v40 = vrot.slane %v561_v30, 2  ;;  %v593_v43 = vrot.slane %v583_v32, 3 }
 0x194   : > { %v549_v42 = vsel %vm543_vm8, %v547_v36, %v548_v37  ;;  %v594_v44 = vrot.slane %v584_v33, 3  ;;  %v624_v60 = vand.u32 127, %v523_v50  ;;  %v2157_v10 = vmov 18  }
 0x195   : > { %v598_v41 = vadd.f32 %v592_v38, %v575_v34  ;;  %v553_v46 = vadd.f32 %v549_v42, %v530_v35  ;;  %v572_v49 = vsel %vm566_vm9, %v570_v39, %v571_v40  ;;  %v2158_v12 = vmov 19  }
 0x196   : > { %v595_v57 = vsel %vm589_vm10, %v593_v43, %v594_v44  ;;  %vm2383_vm11 = vcmp.le.s32.totalorder %v624_v60, %v2347_v51  ;;  %v2159_v13 = vmov 16   ;;  %v2160_v14 = vmov 1  }
 0x197   : > { %v600_v47 = vmul.f32 0.5, %v598_v41  ;;  %v576_v55 = vadd.f32 %v572_v49, %v553_v46  ;;  %v626_v2 = vsel %vm2383_vm11, 1.0, %v2152_v31  ;;  %v2161_v36 = vmov 2  }
 0x198   : > { %v2162_v37 = vmov 3  }
 0x199   : > { %2022 = vtanh.f32 %v600_v47  ;;  %v599_v58 = vadd.f32 %v595_v57, %v576_v55 }
 0x19b   : > { %v601_v59 = vmul.f32 0.5, %v599_v58 }
 0x19d   : > { %2024 = vtanh.f32 %v601_v59 }
 0x1a3   : > { %v2023_v61 = vpop.eup %2022 }
 0x1a4   : > { %v604_v63 = vadd.f32 1.0, %v2023_v61 }
 0x1a6   : > { %v606_v1 = vmul.f32 0.5, %v604_v63 }
 0x1a7   : > { %v2025_v3 = vpop.eup %2024 }
 0x1a8   : > { %v2390_v4 = vmul.f32 %v606_v1, %v598_v41  ;;  %v629_v5 = vpop.permute.xlu0 %628  ;;  %v605_v6 = vadd.f32 1.0, %v2025_v3 }
 0x1a9   : > { %1836 = vmatpush3.msra.mxu1 %v629_v5 }
 0x1aa   : > { %1838 = vmatmul.mubr.msk.f32.vlgmr.msra.gmra.mrb[0].mxu1 %vm631_vm12, %v626_v2  ;;  %1840 = vmatprep.subr.mxu1 %v2152_v31  ;;  %v707_v50 = vpop.permute.xlu1 %706  ;;  %v843_v51 = vpack.c.bf16 %v2390_v4, %v2390_v4  ;;  %v607_v7 = vmul.f32 0.5, %v605_v6 }
 0x1ab   : > { %1841 = vmatpush3.msra.mxu1 %v707_v50  ;;  %1842 = vmatprep.mubr.msk.f32.mxu1 %vm2153_vm1, %v2152_v31 }
 0x1ac   : > { %848 = vrot.lane.b32.xlu0 %v843_v51, %s2151_s18  ;;  %846 = vrot.lane.b32.xlu1 %v843_v51, %s2156_s25  ;;  %v2399_v8 = vmul.f32 %v607_v7, %v599_v58 }
 0x1ad   : > { %1857 = vmatprep.subr.bf16.mxu1 %v2152_v31 }
 0x1ae   : > { %1843 = vmatmul.mubr.msk.f32.vlgmr.msra.gmra.mrb[2].mxu1 %vm631_vm12, %v626_v2  ;;  %v844_v9 = vpack.c.bf16 %v2399_v8, %v2399_v8 }
 0x1af   : > { %1859 = vmatprep.mubr.msk.bf16.mxu1 %vm2153_vm1, %v2152_v31 }
 0x1b0   : > { %899 = vrot.lane.b32.xlu0 %v844_v9, %s2151_s18  ;;  %897 = vrot.lane.b32.xlu1 %v844_v9, %s2156_s25  ;;  %s2166_s18 = smov 48  }
 0x1b4   : > { %1117 = vperm.xlu0 %1989, %v2338_v45   ;;  %1121 = vperm.xlu1 %1990, %v2341_v48  }
 0x1b8   : > { %1992 = vset.pattern.permute.xlu0 %v2157_v10  ;;  %1991 = vset.pattern.permute.xlu1 %v2157_v10 }
 0x1b9   : > { %1261 = vperm.xlu0 %1992, %v2341_v48   ;;  %1257 = vperm.xlu1 %1991, %v2338_v45  }
 0x1bd   : > { %1993 = vset.pattern.permute.xlu1 %v2158_v12  ;;  %1995 = vset.pattern.permute.xlu0 %v2149_v0 }
 0x1be   : > { %1397 = vperm.xlu1 %1993, %v2338_v45  }
 0x1c2   : > { %1401 = vperm.xlu1 %1993, %v2341_v48  }
 0x1c6   : > { %1994 = vset.pattern.permute.xlu1 %v2159_v13 }
 0x1c7   : > { %981 = vperm.xlu1 %1994, %v2338_v45  }
 0x1cb   : > { %986 = vperm.xlu1 %1994, %v2341_v48  }
 0x1cf   : > { %1996 = vset.pattern.permute.xlu1 %v2160_v14 }
 0x21e   : > { %v849_v16 = vpop.permute.xlu0 %848  ;;  %v847_v19 = vpop.permute.xlu1 %846 }
 0x21f   : > { %v854_v17 = vsel %vm631_vm12, %v849_v16, 0 }
 0x220   : > { %1846 = vmatpush3.bf16.xpose.msra.mxu0 %v854_v17 }
 0x221   : > { %1851 = vmatprep.subr.bf16.mxu0 %v2152_v31 }
 0x222   : > { %v900_v18 = vpop.permute.xlu0 %899  ;;  %v898_v45 = vpop.permute.xlu1 %897 }
 0x223   : > { %v905_v20 = vsel %vm631_vm12, %v900_v18, 0 }
 0x227   : > { %1848 = vmatmul.mubr.msk.bf16.vlgmr.msra.gmra.mrb[4].mxu0 %vm631_vm12, %v847_v19 }
 0x228   : > { %1852 = vmatpush3.bf16.xpose.msra.mxu0 %v905_v20  ;;  %1853 = vmatprep.mubr.msk.bf16.mxu0 %vm2153_vm1, %v2152_v31 }
 0x229   : > { %1863 = vmatprep.subr.bf16.mxu0 %v2152_v31 }
 0x22f   : > { %1854 = vmatmul.mubr.msk.bf16.vlgmr.msra.gmra.mrb[8].mxu0 %vm631_vm12, %v898_v45 }
 0x230   : > { %1865 = vmatprep.mubr.msk.bf16.mxu0 %vm2153_vm1, %v2152_v31 }
 0x233   : > { %v1122_v48 = vpop.permute.xlu1 %1121  ;;  %v1118_v39 = vpop.permute.xlu0 %1117 }
 0x234   : > { %v1124_v40 = vmul.f32 %v1118_v39, %v2390_v4  ;;  %v1125_v42 = vmul.f32 %v1122_v48, %v2399_v8 }
 0x236   : > { %v1128_v41 = vpack.c.bf16 %v1124_v40, %v1124_v40  ;;  %v1129_v44 = vpack.c.bf16 %v1125_v42, %v1125_v42 }
 0x238   : > { %v1258_v21 = vpop.permute.xlu1 %1257  ;;  %v1262_v47 = vpop.permute.xlu0 %1261 }
 0x239   : > { %v1264_v46 = vmul.f32 %v1258_v21, %v2390_v4  ;;  %v1265_v49 = vmul.f32 %v1262_v47, %v2399_v8 }
 0x23b   : > { %v1268_v55 = vpack.c.bf16 %v1264_v46, %v1264_v46  ;;  %v1269_v57 = vpack.c.bf16 %v1265_v49, %v1265_v49 }
 0x23d   : > { %v1398_v22 = vpop.permute.xlu1 %1397 }
 0x23e   : > { %v1404_v43 = vmul.f32 %v1398_v22, %v2390_v4 }
 0x241   : > { %v1402_v23 = vpop.permute.xlu1 %1401 }
 0x242   : > { %v1405_v58 = vmul.f32 %v1402_v23, %v2399_v8 }
 0x244   : > { %v1409_v59 = vpack.c.bf16 %v1405_v58, %v1405_v58 }
 0x246   : > { %v982_v24 = vpop.permute.xlu1 %981 }
 0x247   : > { %v989_v25 = vmul.f32 %v982_v24, %v2390_v4 }
 0x249   : > { %v993_v26 = vpack.c.bf16 %v989_v25, %v989_v25 }
 0x24a   : > { %v987_v27 = vpop.permute.xlu1 %986 }
 0x24b   : > { %v1000_v28 = vsel %vm998_vm13, %v993_v26, 0  ;;  %v990_v29 = vmul.f32 %v987_v27, %v2399_v8 }
 0x24c   : > { %1858 = vmatpush3.bf16.msra.mxu1 %v1000_v28 }
 0x24d   : > { %v994_v30 = vpack.c.bf16 %v990_v29, %v990_v29  ;;  %1869 = vmatprep.subr.bf16.mxu1 %v2152_v31 }
 0x24f   : > { %v1046_v32 = vsel %vm998_vm13, %v994_v30, 0 }
 0x250   : > { %1864 = vmatpush3.bf16.msra.mxu0 %v1046_v32 }
 0x251   : > { %1875 = vmatprep.subr.bf16.mxu0 %v2152_v31 }
 0x27d   : > { %v701_v33 = vpop.f32.mrb[0].mxu1 }
 0x27e   : > { %v1839_v34 = vpop.f32.mrb[1].mxu1  ;;  %949 = vperm.xlu0 %1995, %v701_v33   ;;  %1089 = vperm.xlu1 %1996, %v701_v33  }
 0x281   : > { %v775_v35 = vpop.f32.mrb[2].mxu1 }
 0x282   : > { %1997 = vset.pattern.permute.xlu0 %v2161_v36  ;;  %1998 = vset.pattern.permute.xlu1 %v2162_v37  ;;  %v1844_v38 = vpop.f32.mrb[3].mxu1 }
 0x283   : > { %1229 = vperm.xlu0 %1997, %v701_v33   ;;  %1369 = vperm.xlu1 %1998, %v701_v33  }
 0x287   : > { %2000 = vset.pattern.permute.xlu0 %v2160_v14  ;;  %1999 = vset.pattern.permute.xlu1 %v2149_v0  ;;  %v1408_v0 = vpack.c.bf16 %v1404_v43, %v1404_v43 }
 0x288   : > { %1093 = vperm.xlu0 %2000, %v775_v35   ;;  %954 = vperm.xlu1 %1999, %v775_v35  }
 0x28c   : > { %1131 = vrot.lane.b32.xlu0 %v1128_v41, %s2155_s11  ;;  %2001 = vset.pattern.permute.xlu1 %v2161_v36 }
 0x28d   : > { %1233 = vperm.xlu1 %2001, %v775_v35   ;;  %2002 = vset.pattern.permute.xlu0 %v2162_v37 }
 0x290   : > { %1373 = vperm.xlu0 %2002, %v775_v35  }
 0x2ae   : > { %811 = vxpose.xlu0.b32.start.end [1/1] (short) (narrow) %v775_v35, 8 }
 0x2b6   : > { %779 = vxpose.xlu1.b32.start.end [1/1] (short) (narrow) %v701_v33, 8 }
 0x2d4   : > { %1180 = vrot.lane.b32.xlu1 %v1129_v44, %s2155_s11  ;;  %s366_s11 = sand.u32 1, %s2136_s14  }
 0x2d5   : > { %s1769_s28 = sshll.u32 %s366_s11, 4 }
 0x2d6   : > { %s368_s27 = scalar_lea.vmem [#allocation5], %s1769_s28  ;;  %s2167_s28 = smov [#allocation5]  }
 0x2d7   : > { %1411 = vrot.lane.b32.xlu0 %v1408_v0, %s2163_s26  ;;  %s1689_s25 = sshll.u32 %s368_s27, 4  ;;  %s2082_s20 = sshll.u32 %s2167_s28, 4  ;;  %s2578_s25 = int_to_ptr.vmem [resolvable:$true] %s1689_s25  ;;  %s2083_s20 = int_to_ptr.vmem [resolvable:$false] %s2082_s20 }
 0x2d8   : > { %1271 = vrot.lane.b32.xlu1 %v1268_v55, %s2164_s29  ;;  %2003 = vset.pattern.permute.xlu0 %v2158_v12  ;;  %s2084_s21 = scalar_lea.vmem %s2083_s20, 512  ;;  %p2085_p2 = scmp.lt.s32.totalorder %s2578_s25, %s2083_s20 }
 0x2dc   : > { %1320 = vrot.lane.b32.xlu1 %v1269_v57, %s2164_s29 }
 0x2e0   : > { %1460 = vrot.lane.b32.xlu1 %v1409_v59, %s2163_s26  ;;  %s1805_s26 = sshll.u32 %s2246_s17, 8  ;;  %s2587_s17 = scalar_lea.sflag [#allocation4], %s366_s11 }
 0x2fa   : > { %v2444_v60 = vpop.f32.mrb[4].mxu0 }
 0x2fb   : > { %v1849_v61 = vpop.f32.mrb[5].mxu0 }
 0x2fc   : > { %v893_v63 = vpop.f32.mrb[6].mxu0 }
 0x2fd   : > { %v1850_v1 = vpop.f32.mrb[7].mxu0  ;;  %v950_v50 = vpop.permute.xlu0 %949 }
 0x2fe   : > { %v1090_v9 = vpop.permute.xlu1 %1089 }
 0x302   : > { %v2446_v2 = vpop.f32.mrb[8].mxu0  ;;  %v1230_v51 = vpop.permute.xlu0 %1229 }
 0x303   : > { %v1855_v3 = vpop.f32.mrb[9].mxu0  ;;  %v1370_v12 = vpop.permute.xlu1 %1369 }
 0x304   : > { %v944_v5 = vpop.f32.mrb[10].mxu0 }
 0x305   : > { %v1856_v6 = vpop.f32.mrb[11].mxu0 }
 0x307   : > { %v1094_v7 = vpop.permute.xlu0 %1093  ;;  %v955_v14 = vpop.permute.xlu1 %954 }
 0x30b   : > { %v2448_v10 = vpop.permute.xlu0 %1131 }
 0x30c   : > { %v1234_v48 = vpop.permute.xlu1 %1233 }
 0x30f   : > { %v1374_v13 = vpop.permute.xlu0 %1373 }
 0x32e   : > { %v827_v16 = vpop.trf.xlu0 }
 0x32f   : > { %v964_v17 = vrot.slane %v827_v16, %v2362_v56  ;;  %v1103_v18 = vrot.slane %v827_v16, %v2350_v52  ;;  %v1243_v19 = vrot.slane %v827_v16, %v2353_v53  ;;  %v1383_v30 = vrot.slane %v827_v16, %v2356_v54 }
 0x331   : > { %v966_v20 = vsub.f32 %v955_v14, %v964_v17  ;;  %v1105_v45 = vsub.f32 %v1094_v7, %v1103_v18  ;;  %v1245_v25 = vsub.f32 %v1234_v48, %v1243_v19  ;;  %v1137_v14 = vsel %vm998_vm13, %v2448_v10, 0 }
 0x333   : > { %v970_v21 = vsel %vm2383_vm11, %v966_v20, 0.0  ;;  %v1107_v22 = vsel %vm2383_vm11, %v1105_v45, 0.0  ;;  %v1247_v29 = vsel %vm2383_vm11, %v1245_v25, 0.0 }
 0x334   : > { %v973_v23 = vmul.f32 1.442695, %v970_v21  ;;  %v1110_v24 = vmul.f32 1.442695, %v1107_v22  ;;  %v1250_v35 = vmul.f32 1.442695, %v1247_v29 }
 0x336   : > { %2026 = vpow2.f32 %v973_v23  ;;  %v795_v26 = vpop.trf.xlu1 }
 0x337   : > { %v960_v27 = vrot.slane %v795_v26, %v2362_v56  ;;  %v1099_v28 = vrot.slane %v795_v26, %v2350_v52  ;;  %2028 = vpow2.f32 %v1110_v24  ;;  %v1239_v34 = vrot.slane %v795_v26, %v2353_v53 }
 0x338   : > { %v1385_v56 = vsub.f32 %v1374_v13, %v1383_v30  ;;  %v1379_v42 = vrot.slane %v795_v26, %v2356_v54 }
 0x339   : > { %v965_v32 = vsub.f32 %v950_v50, %v960_v27  ;;  %v1104_v33 = vsub.f32 %v1090_v9, %v1099_v28  ;;  %v1244_v39 = vsub.f32 %v1230_v51, %v1239_v34 }
 0x33a   : > { %v1387_v41 = vsel %vm2383_vm11, %v1385_v56, 0.0  ;;  %v1384_v55 = vsub.f32 %v1370_v12, %v1379_v42 }
 0x33b   : > { %v969_v36 = vsel %vm2383_vm11, %v965_v32, 0.0  ;;  %v1106_v37 = vsel %vm2383_vm11, %v1104_v33, 0.0  ;;  %v1246_v53 = vsel %vm2383_vm11, %v1244_v39, 0.0  ;;  %v1390_v46 = vmul.f32 1.442695, %v1387_v41 }
 0x33c   : > { %v971_v38 = vmul.f32 1.442695, %v969_v36  ;;  %v1108_v52 = vmul.f32 1.442695, %v1106_v37  ;;  %v1248_v0 = vmul.f32 1.442695, %v1246_v53 }
 0x33d   : > { %v1386_v63 = vsel %vm2383_vm11, %v1384_v55, 0.0 }
 0x33e   : > { %2030 = vpow2.f32 %v971_v38  ;;  %v1388_v51 = vmul.f32 1.442695, %v1386_v63 }
 0x33f   : > { %2032 = vpow2.f32 %v1250_v35 }
 0x340   : > { %v2027_v40 = vpop.eup %2026  ;;  %2034 = vpow2.f32 %v1108_v52 }
 0x341   : > { %v976_v43 = vmul.f32 %v2027_v40, %v2446_v2  ;;  %v2029_v44 = vpop.eup %2028  ;;  %2036 = vpow2.f32 %v1390_v46 }
 0x342   : > { %v1113_v57 = vmul.f32 %v2029_v44, %v2446_v2  ;;  %2038 = vpow2.f32 %v1248_v0 }
 0x343   : > { %v978_v47 = vsel %vm2383_vm11, %v976_v43, 0.0  ;;  %2040 = vpow2.f32 %v1388_v51 }
 0x344   : > { %v992_v49 = vpack.c.bf16 %v978_v47, %v978_v47  ;;  %v1115_v3 = vsel %vm2383_vm11, %v1113_v57, 0.0 }
 0x345   : > { %v1127_v9 = vpack.c.bf16 %v1115_v3, %v1115_v3 }
 0x346   : > { %1866 = vmatmul.mubr.msk.bf16.vlgmr.msra.gmra.mrb[12].mxu0 %vm631_vm12, %v992_v49  ;;  %v1181_v58 = vpop.permute.xlu1 %1180 }
 0x347   : > { %v1186_v59 = vsel %vm998_vm13, %v1181_v58, 0  ;;  %1877 = vmatprep.mubr.msk.bf16.mxu0 %vm2153_vm1, %v2152_v31 }
 0x348   : > { %v2031_v54 = vpop.eup %2030  ;;  %1876 = vmatpush3.bf16.msra.mxu0 %v1186_v59 }
 0x349   : > { %v2033_v61 = vpop.eup %2032  ;;  %v975_v1 = vmul.f32 %v2031_v54, %v2444_v60  ;;  %1887 = vmatprep.subr.bf16.mxu0 %v2152_v31  ;;  %v1412_v28 = vpop.permute.xlu0 %1411 }
 0x34a   : > { %v2035_v5 = vpop.eup %2034  ;;  %v1272_v6 = vpop.permute.xlu1 %1271  ;;  %v1253_v13 = vmul.f32 %v2033_v61, %v2446_v2  ;;  %v1417_v33 = vsel %vm998_vm13, %v1412_v28, 0 }
 0x34b   : > { %v977_v50 = vsel %vm2383_vm11, %v975_v1, 0.0  ;;  %v1112_v12 = vmul.f32 %v2035_v5, %v2444_v60  ;;  %v2037_v18 = vpop.eup %2036  ;;  %v1277_v24 = vsel %vm998_vm13, %v1272_v6, 0 }
 0x34c   : > { %v991_v7 = vpack.c.bf16 %v977_v50, %v977_v50  ;;  %v1255_v19 = vsel %vm2383_vm11, %v1253_v13, 0.0  ;;  %v2039_v20 = vpop.eup %2038  ;;  %v1393_v23 = vmul.f32 %v2037_v18, %v2446_v2 }
 0x34d   : > { %v1114_v10 = vsel %vm2383_vm11, %v1112_v12, 0.0  ;;  %v1267_v21 = vpack.c.bf16 %v1255_v19, %v1255_v19  ;;  %v1252_v22 = vmul.f32 %v2039_v20, %v2444_v60  ;;  %v2041_v27 = vpop.eup %2040  ;;  %v1551_v12 = vmul.f32 0.5, %v2322_v11  ;;  %v1792_v20 = vld [vmem:[%s2634_s6] ss:$0 sm:$0xff] }
 0x34e   : > { %1860 = vmatmul.mubr.msk.bf16.vlgmr.msra.gmra.mrb[4].mxu1 %vm631_vm12, %v991_v7  ;;  %1878 = vmatmul.mubr.msk.bf16.vlgmr.msra.gmra.mrb[16].mxu0 %vm631_vm12, %v1127_v9  ;;  %v1321_v16 = vpop.permute.xlu1 %1320  ;;  %v1126_v48 = vpack.c.bf16 %v1114_v10, %v1114_v10  ;;  %v1395_v26 = vsel %vm2383_vm11, %v1393_v23, 0.0  ;;  %v1392_v32 = vmul.f32 %v2041_v27, %v2444_v60  ;;  %v1552_v9 = vmul.f32 0.5, %v2325_v15 }
 0x34f   : > { %1870 = vmatpush3.bf16.msra.mxu1 %v1137_v14  ;;  %v1326_v17 = vsel %vm998_vm13, %v1321_v16, 0  ;;  %1871 = vmatprep.mubr.msk.bf16.mxu1 %vm2153_vm1, %v2152_v31  ;;  %v1254_v2 = vsel %vm2383_vm11, %v1252_v22, 0.0  ;;  %v1407_v30 = vpack.c.bf16 %v1395_v26, %v1395_v26 }
 0x350   : > { %1888 = vmatpush3.bf16.msra.mxu0 %v1326_v17  ;;  %1881 = vmatprep.subr.bf16.mxu1 %v2152_v31  ;;  %v1266_v29 = vpack.c.bf16 %v1254_v2, %v1254_v2  ;;  %v1394_v34 = vsel %vm2383_vm11, %v1392_v32, 0.0  ;;  %2042 = vtanh.f32 %v1552_v9 }
 0x351   : > { %1889 = vmatprep.mubr.msk.bf16.mxu0 %vm2153_vm1, %v2152_v31  ;;  %1899 = vmatprep.subr.bf16.mxu0 %v2152_v31  ;;  %v1406_v35 = vpack.c.bf16 %v1394_v34, %v1394_v34  ;;  %2044 = vtanh.f32 %v1551_v12 }
 0x352   : > { %v1461_v45 = vpop.permute.xlu1 %1460 }
 0x353   : > { %v1466_v25 = vsel %vm998_vm13, %v1461_v45, 0 }
 0x356   : > { %1872 = vmatmul.mubr.msk.bf16.vlgmr.msra.gmra.mrb[8].mxu1 %vm631_vm12, %v1126_v48  ;;  %1890 = vmatmul.mubr.msk.bf16.vlgmr.msra.gmra.mrb[20].mxu0 %vm631_vm12, %v1267_v21  ;;  %v1548_v21 = vmul.f32 %v1792_v20, %v2399_v8 }
 0x357   : > { %1882 = vmatpush3.bf16.msra.mxu1 %v1277_v24  ;;  %1900 = vmatpush3.bf16.msra.mxu0 %v1466_v25 }
 0x358   : > { %1883 = vmatprep.mubr.msk.bf16.mxu1 %vm2153_vm1, %v2152_v31  ;;  %1893 = vmatprep.subr.bf16.mxu1 %v2152_v31 }
 0x359   : > { %1901 = vmatprep.mubr.msk.bf16.mxu0 %vm2153_vm1, %v2152_v31 }
 0x35a   : > { %v2043_v13 = vpop.eup %2042 }
 0x35b   : > { %v1556_v16 = vadd.f32 1.0, %v2043_v13  ;;  %v2045_v10 = vpop.eup %2044 }
 0x35c   : > { %v1555_v24 = vadd.f32 1.0, %v2045_v10 }
 0x35d   : > { %v1558_v18 = vmul.f32 0.5, %v1556_v16 }
 0x35e   : > { %1884 = vmatmul.mubr.msk.bf16.vlgmr.msra.gmra.mrb[12].mxu1 %vm631_vm12, %v1266_v29  ;;  %1902 = vmatmul.mubr.msk.bf16.vlgmr.msra.gmra.mrb[24].mxu0 %vm631_vm12, %v1407_v30  ;;  %v1557_v28 = vmul.f32 0.5, %v1555_v24 }
 0x35f   : > { %1894 = vmatpush3.bf16.msra.mxu1 %v1417_v33  ;;  %1895 = vmatprep.mubr.msk.bf16.mxu1 %vm2153_vm1, %v2152_v31  ;;  %v1560_v25 = vmul.f32 %v1558_v18, %v2325_v15  ;;  %v1547_v33 = vmul.f32 %v1792_v20, %v2390_v4  ;;  %v2011_v4 = vld [vmem:[%s2636_s8 + $0x8] sm:$0xff]  }
 0x360   : > { %1905 = vmatprep.subr.bf16.mxu1 %v2152_v31  ;;  %v1559_v15 = vmul.f32 %v1557_v28, %v2322_v11  ;;  %v2012_v11 = vld [vmem:[%s2636_s8 + $0x10] sm:$0xff]  }
 0x366   : > { %1896 = vmatmul.mubr.msk.bf16.vlgmr.msra.gmra.mrb[16].mxu1 %vm631_vm12, %v1406_v35 }
 0x367   : > { %1913 = vmatprep.mubr.msk.bf16.mxu1 %vm2153_vm1, %v2152_v31 }
 0x419   : > { %v1082_v60 = vpop.f32.mrb[12].mxu0 }
 0x41a   : > { %v1867_v36 = vpop.f32.mrb[13].mxu0 }
 0x41b   : > { %v1085_v37 = vpop.f32.mrb[14].mxu0 }
 0x41c   : > { %v1868_v56 = vpop.f32.mrb[15].mxu0 }
 0x421   : > { %v2532_v38 = vpop.f32.mrb[4].mxu1  ;;  %v1222_v52 = vpop.f32.mrb[16].mxu0 }
 0x422   : > { %v1861_v39 = vpop.f32.mrb[5].mxu1  ;;  %1512 = vrot.lane.b32.xlu1 %v1222_v52, %s2150_s12  ;;  %v1879_v40 = vpop.f32.mrb[17].mxu0  ;;  %v2013_v52 = vld [vmem:[%s2636_s8 + $0x18] sm:$0xff]  }
 0x423   : > { %v1039_v41 = vpop.f32.mrb[6].mxu1  ;;  %v1225_v62 = vpop.f32.mrb[18].mxu0 }
 0x424   : > { %v1862_v53 = vpop.f32.mrb[7].mxu1  ;;  %v1880_v42 = vpop.f32.mrb[19].mxu0 }
 0x429   : > { %v1173_v43 = vpop.f32.mrb[8].mxu1  ;;  %v1362_v44 = vpop.f32.mrb[20].mxu0 }
 0x42a   : > { %1510 = vrot.lane.b32.xlu0 %v1173_v43, %s2150_s12  ;;  %v1873_v46 = vpop.f32.mrb[9].mxu1  ;;  %1520 = vrot.lane.b32.xlu1 %v1362_v44, %s2165_s30  ;;  %v1891_v47 = vpop.f32.mrb[21].mxu0  ;;  %s2078_s12 = scalar_lea.vmem %s2578_s25, 256 }
 0x42b   : > { %v1176_v0 = vpop.f32.mrb[10].mxu1  ;;  %v1365_v49 = vpop.f32.mrb[22].mxu0  ;;  %v1793_v47 = vld [vmem:[%s2635_s7] ss:$0 sm:$0xff]  ;;  %p2079_p6 = scmp.ne.s32.totalorder %s2578_s25, %s2078_s12  ;;  %p2086_p3 = scmp.lt.s32.totalorder %s2084_s21, %s2078_s12 }
 0x42c   : > { %v1874_v55 = vpop.f32.mrb[11].mxu1  ;;  %v1892_v57 = vpop.f32.mrb[23].mxu0 }
 0x42d   : > { %v1794_v57 = vld [vmem:[%s2637_s9] ss:$0 sm:$0xff]  ;;  %p2080_p10 = pnand %p2079_p6, %p2651_p9  ;;  %p2087_p4 = por %p2086_p3, %p2085_p2 }
 0x42f   : > { %p2081_p12 = pneg %p2080_p10 }
 0x431   : > { %v1313_v58 = vpop.f32.mrb[12].mxu1  ;;  %v1502_v59 = vpop.f32.mrb[24].mxu0  ;;  %p2088_p7 = pnand %p2087_p4, %p2081_p12 }
 0x432   : > { %1518 = vrot.lane.b32.xlu0 %v1313_v58, %s2165_s30  ;;  %v1885_v54 = vpop.f32.mrb[13].mxu1  ;;  %1528 = vrot.lane.b32.xlu1 %v1502_v59, %s2166_s18  ;;  %v1903_v61 = vpop.f32.mrb[25].mxu0 }
 0x433   : > { %v1316_v63 = vpop.f32.mrb[14].mxu1  ;;  %v1505_v1 = vpop.f32.mrb[26].mxu0 }
 0x434   : > { %v1886_v3 = vpop.f32.mrb[15].mxu1  ;;  %v1904_v5 = vpop.f32.mrb[27].mxu0 }
 0x439   : > { %v1453_v6 = vpop.f32.mrb[16].mxu1 }
 0x43a   : > { %1526 = vrot.lane.b32.xlu0 %v1453_v6, %s2166_s18  ;;  %v1897_v50 = vpop.f32.mrb[17].mxu1  ;;  %s2584_s18 = scalar_lea.hbm %s2638_s10, %s1805_s26 }
 0x43b   : > { %v1456_v51 = vpop.f32.mrb[18].mxu1 }
 0x43c   : > { %v1898_v7 = vpop.f32.mrb[19].mxu1 }
 0x494   : > { %v1513_v14 = vpop.permute.xlu1 %1512 }
 0x495   : > { %v1534_v19 = vsel %vm1532_vm14, %v1082_v60, %v1513_v14 }
 0x49c   : > { %v1521_v17 = vpop.permute.xlu1 %1520  ;;  %v1511_v45 = vpop.permute.xlu0 %1510 }
 0x49d   : > { %v1536_v48 = vsel %vm404_vm0, %v1534_v19, %v1521_v17  ;;  %v1533_v30 = vsel %vm1532_vm14, %v2532_v38, %v1511_v45  ;;  %v2010_v38 = vld [vmem:[%s2636_s8] sm:$0xff]  }
 0x49e   : > { %1906 = vmatpush3.bf16.msra.mxu1 %v2010_v38 }
 0x49f   : > { %1907 = vmatprep.subr.bf16.mxu1 %v2152_v31 }
 0x4a2   : > { %1908 = vmatpush3.bf16.msra.mxu1 %v2011_v4 }
 0x4a3   : > { %1909 = vmatprep.subr.bf16.mxu1 %v2152_v31 }
 0x4a4   : > { %v1529_v22 = vpop.permute.xlu1 %1528  ;;  %v1519_v26 = vpop.permute.xlu0 %1518 }
 0x4a5   : > { %v1539_v23 = vsel %vm1537_vm15, %v1536_v48, %v1529_v22  ;;  %v1535_v32 = vsel %vm404_vm0, %v1533_v30, %v1519_v26 }
 0x4a6   : > { %v1550_v2 = vadd.f32 %v1548_v21, %v1539_v23  ;;  %1910 = vmatpush3.bf16.msra.mxu1 %v2012_v11 }
 0x4a7   : > { %1911 = vmatprep.subr.bf16.mxu1 %v2152_v31 }
 0x4a8   : > { %v1562_v27 = vmul.f32 %v1560_v25, %v1550_v2 }
 0x4aa   : > { %v1564_v29 = vmul.f32 %v1562_v27, %v1562_v27  ;;  %1912 = vmatpush3.bf16.msra.mxu1 %v2013_v52 }
 0x4ac   : > { %v1527_v34 = vpop.permute.xlu0 %1526  ;;  %v1568_v8 = vsel %vm507_vm6, %v1564_v29, 0.0 }
 0x4ad   : > { %v1538_v35 = vsel %vm1537_vm15, %v1535_v32, %v1527_v34  ;;  %1569 = vadd.xlane.f32.xlu1 %v1568_v8 }
 0x4ae   : > { %v1549_v60 = vadd.f32 %v1547_v33, %v1538_v35 }
 0x4b0   : > { %v1561_v36 = vmul.f32 %v1559_v15, %v1549_v60 }
 0x4b2   : > { %v1563_v37 = vmul.f32 %v1561_v36, %v1561_v36 }
 0x4b4   : > { %v1565_v56 = vsel %vm507_vm6, %v1563_v37, 0.0 }
 0x4b5   : > { %1566 = vadd.xlane.f32.xlu0 %v1565_v56 }
 0x53a   : > { %v1570_v39 = vpop.xlane.xlu1 %1569 }
 0x53b   : > { %v1573_v40 = vmul.f32 0.015625, %v1570_v39 }
 0x53d   : > { %v1575_v41 = vadd.f32 1e-05, %v1573_v40 }
 0x53f   : > { %2046 = vrsqrt.f32 %v1575_v41 }
 0x542   : > { %v1567_v62 = vpop.xlane.xlu0 %1566 }
 0x543   : > { %v1572_v53 = vmul.f32 0.015625, %v1567_v62 }
 0x545   : > { %v1574_v42 = vadd.f32 1e-05, %v1572_v53 }
 0x547   : > { %2048 = vrsqrt.f32 %v1574_v42 }
 0x549   : > { %v2047_v43 = vpop.eup %2046 }
 0x54a   : > { %v1579_v44 = vmul.f32 %v2047_v43, %v1562_v27 }
 0x54c   : > { %v1588_v31 = vmul.f32 %v1793_v47, %v1579_v44 }
 0x551   : > { %v2049_v46 = vpop.eup %2048 }
 0x552   : > { %v1578_v0 = vmul.f32 %v2049_v46, %v1561_v36 }
 0x554   : > { %v1587_v49 = vmul.f32 %v1793_v47, %v1578_v0 }
 0x556   : > { %v1589_v55 = vpack.c.bf16 %v1588_v31, %v1587_v49 }
 0x558   : > { %1914 = vmatmul.mubr.msk.bf16.vlgmr.msra.gmra.mrb[20].mxu1 %vm507_vm6, %v1589_v55 }
 0x62b   : > { %v1666_v58 = vpop.f32.mrb[20].mxu1 }
 0x62c   : > { %v1667_v59 = vadd.f32 %v1794_v57, %v1666_v58  ;;  %v1915_v54 = vpop.f32.mrb[21].mxu1 }
 0x62d   : > { %v1669_v61 = vpop.f32.mrb[22].mxu1 }
 0x62e   : > { %1673 = vst.msk [vmem:[%s368_s27] sm:$0xff] %vm404_vm0, %v1667_v59  ;;  %v1670_v63 = vadd.f32 %v1794_v57, %v1669_v61  ;;  %v1916_v1 = vpop.f32.mrb[23].mxu1 }
 0x630   : > { %1674 = vst.msk [vmem:[%s368_s27 + $0x8] sm:$0xff] %vm404_vm0, %v1670_v63 }
 0x631   : > { %2091 = shalt.err (!%p2088_p7)
}
 0x632   : > { %s2092_s11 = scalar_lea.hbm %s2584_s18, 256  ;;  %s2096_s29 = scalar_lea.hbm %s2638_s10, 512 }
 0x633   : > { %p2093_p8 = scmp.ne.s32.totalorder %s2584_s18, %s2092_s11  ;;  %p2097_p1 = scmp.lt.u32.totalorder %s2584_s18, %s2638_s10 }
 0x634   : > { %p2098_p0 = scmp.lt.u32.totalorder %s2096_s29, %s2092_s11  ;;  %p2100_p6 = scmp.lt.u32.totalorder %s2092_s11, %s2584_s18 }
 0x635   : > { %p2094_p11 = pnand %p2093_p8, %p2651_p9 }
 0x636   : > { %p2099_p5 = por %p2098_p0, %p2097_p1 }
 0x637   : > { %p2095_p13 = pneg %p2094_p11 }
 0x638   : > { %p2101_p10 = por %p2100_p6, %p2099_p5 }
 0x63a   : > { %p2102_p12 = pnand %p2101_p10, %p2095_p13 }
 0x63c   : > { %2105 = shalt.err (!%p2102_p12)
}
 0x63d   : > { %s2168_s12 = smov 128   ;;  %s2169_s20 = smov 8  }
 0x63e   : > { %1921 = dma.vmem_to_hbm [thread:$0]  (%p2651_p9), %s2578_s25, 256, %s2584_s18, %s2587_s17, %s2168_s12, %s2168_s12, %s2169_s20  }
 0x63f PF: > { %p1933_p2 = scmp.ge.s32.totalorder %s2144_s16, 2  ;;  %s1704_s21 = sand.u32 1, %s2132_s13  }
 0x640   : > { %p2652_p3 = scmp.ne.s32.totalorder %s2643_s24, 0  ;;  %s1705_s11 = scalar_lea.sflag [#allocation4], %s1704_s21 }
 0x642   : > { %p1928_p4 = pnand %p1933_p2, %p2652_p3 }
 0x644   : > { %2127 = dma.done.wait (!%p1928_p4), %s1705_s11, 256  }
 0x645   : > { %2129 = vsyncadd (!%p1928_p4), %s1705_s11, 4294967040  ;;  %p21_p7 = scmp.ge.s32.totalorder %s2250_s19, 4   ;;  %s2653_s13 = smov %s2136_s14 }
 0x646   : > { %s2654_s14 = smov %s2140_s15  ;;  %s2655_s15 = smov %s2261_s22 }
 0x647   : > { %s2656_s16 = smov %s2250_s19  ;;  %23 = sbr.rel (!%p21_p7) target bundleno = 4 (0x4), region = 100 }
 0x64e   :  { %1710 = vsyncpa [#allocation3], 1 }
 0x64f   :  { %1712 = vsyncpa [#allocation3 + $0x1], 1 }
 0x650   :  { %1713 = vsyncpa [#allocation4], 1 }
 0x651   :  { %1715 = vsyncpa [#allocation4 + $0x1], 1 }

</bundles_post_ra>
